<compile_context>
chip_gen: v7x
topology: tpu7x:2x2x1
jax: 0.10.0
libtpu: 0.0.40
codegen_flags: <defaults>
</compile_context>

<pallas_src>
import jax
import jax.numpy as jnp
from jax import lax
from jax.experimental import pallas as pl
from jax.experimental.pallas import tpu as pltpu

LN_EPS = 1e-5


def _round_up(x, m):
    return (x + m - 1) // m * m


def _vmem_limit_bytes():
    try:
        cap = int(pltpu.get_tpu_info().vmem_capacity_bytes)
    except Exception:
        cap = 64 * 1024 * 1024          # conservative (v7x physical VMEM/TC)
    return max(32 * 1024 * 1024, min((cap * 3) // 4, 100 * 1024 * 1024))


def _make_kernel(n_pad, te, h_true):
    inv_h = 1.0 / float(h_true)
    bf16 = jnp.bfloat16

    def kernel(x_ref,          # [N_pad, Hp] f32 node features (VMEM resident)
               e_ref,          # [TE, Hp]   bf16 edge-feature tile
               send_col_ref,   # [TE, 1] int32 senders   (sentinel 2*N_pad = padded)
               recv_col_ref,   # [TE, 1] int32 receivers (sentinel 2*N_pad = padded)
               recv_lane_ref,  # [1, TE] int32 receivers, lane-oriented (-1 = padded)
               ws_ref, wr_ref, we_ref,   # [Hp, Hp] bf16 split Linear(3H->H) weights
               b_ref, g_ref, beta_ref,   # [1, Hp] f32 bias / LN gamma / LN beta
               out_ref,        # [N_pad, Hp] f32 output; doubles as the accumulator
               xw_ref):        # VMEM scratch [2*N_pad, Hp] bf16: [x@Ws ; x@Wr]
        j = pl.program_id(0)

        @pl.when(j == 0)
        def _init():
            xb = x_ref[...].astype(bf16)
            xw_ref[pl.ds(0, n_pad), :] = jnp.dot(
                xb, ws_ref[...], preferred_element_type=jnp.float32).astype(bf16)
            xw_ref[pl.ds(n_pad, n_pad), :] = jnp.dot(
                xb, wr_ref[...], preferred_element_type=jnp.float32).astype(bf16)
            out_ref[...] = jnp.zeros_like(out_ref)

        # Edge-feature term first: MXU streams while the one-hots build on the VPU.
        msg = jnp.dot(e_ref[...], we_ref[...], preferred_element_type=jnp.float32)

        # Fused gather + projection: one-hot over [senders | receivers] columns
        # against the precomputed [x@Ws ; x@Wr] stack.  Padded edges (sentinel
        # 2*N_pad) match no column -> zero rows (masked again by the scatter).
        lane = lax.broadcasted_iota(jnp.int32, (te, 2 * n_pad), 1)
        oh_sr = jnp.logical_or(lane == send_col_ref[...],
                               lane == recv_col_ref[...] + n_pad).astype(bf16)
        msg = msg + jnp.dot(oh_sr, xw_ref[...], preferred_element_type=jnp.float32)
        msg = jnp.maximum(msg + b_ref[...], 0.0)           # bias + ReLU in f32 (VPU)

        # Scatter-add: one-hot built pre-transposed [N_pad, TE] (no XLU transpose).
        # Padded edges carry receiver -1 -> all-zero columns.
        node_ids = lax.broadcasted_iota(jnp.int32, (n_pad, te), 0)
        oh_t = (node_ids == recv_lane_ref[...]).astype(bf16)
        out_ref[...] += jnp.dot(oh_t, msg.astype(bf16),
                                preferred_element_type=jnp.float32)

        # Finalize: residual + two-pass (centered) LayerNorm over the true H lanes.
        @pl.when(j == pl.num_programs(0) - 1)
        def _finalize():
            h = out_ref[...] + x_ref[...]
            valid = lax.broadcasted_iota(jnp.int32, h.shape, 1) < h_true
            mean = jnp.sum(jnp.where(valid, h, 0.0), axis=-1, keepdims=True) * inv_h
            d = jnp.where(valid, h - mean, 0.0)
            var = jnp.sum(d * d, axis=-1, keepdims=True) * inv_h
            out_ref[...] = d * lax.rsqrt(var + LN_EPS) * g_ref[...] + beta_ref[...]

    return kernel


def sparse_message_passing(x, senders, receivers, edge_feat, W, b, gamma, beta,
                           *, te=None):
    """SparseMessagePassing forward (mpnn message fn, sum aggregation, ReLU, LN).

    x: [N, H] f32, senders/receivers: [E] int, edge_feat: [E, H] f32,
    W: [H, 3H] (torch Linear weight), b/gamma/beta: [H].
    """
    n, h = x.shape
    e = edge_feat.shape[0]
    f32, bf16 = jnp.float32, jnp.bfloat16

    h_pad = max(128, _round_up(h, 128))
    # N padded to 64 so 2*N_pad is lane-aligned (128) for the gather one-hot and
    # N_pad is sublane-aligned for both f32 and packed bf16 rows.
    n_pad = _round_up(max(n, 1), 64)
    if te is None:
        te = 256                       # 256-wide MXU tiles on v6e/v7x
    te = max(128, _round_up(te, 128))  # [1, TE] receiver row must be lane-aligned
    e_pad = _round_up(max(e, 1), te)
    eb = e_pad // te

    # --- pad / reshape inputs -------------------------------------------------
    x_p = jnp.zeros((n_pad, h_pad), f32).at[:n, :h].set(x.astype(f32))
    e_p = jnp.zeros((e_pad, h_pad), bf16).at[:e, :h].set(edge_feat.astype(bf16))

    sentinel = jnp.int32(2 * n_pad)    # matches no gather column
    send_col = jnp.full((e_pad, 1), sentinel, jnp.int32).at[:e, 0].set(
        senders.astype(jnp.int32))
    recv_col = jnp.full((e_pad, 1), sentinel, jnp.int32).at[:e, 0].set(
        receivers.astype(jnp.int32))
    recv_lane = jnp.full((1, e_pad), -1, jnp.int32).at[0, :e].set(
        receivers.astype(jnp.int32))

    # Split Linear(3H -> H): y = xs @ Ws + xr @ Wr + e @ We + b; weights in bf16.
    w_s = jnp.zeros((h_pad, h_pad), bf16).at[:h, :h].set(W[:, 0 * h:1 * h].T.astype(bf16))
    w_r = jnp.zeros((h_pad, h_pad), bf16).at[:h, :h].set(W[:, 1 * h:2 * h].T.astype(bf16))
    w_e = jnp.zeros((h_pad, h_pad), bf16).at[:h, :h].set(W[:, 2 * h:3 * h].T.astype(bf16))
    b_p = jnp.zeros((1, h_pad), f32).at[0, :h].set(b.astype(f32))
    g_p = jnp.zeros((1, h_pad), f32).at[0, :h].set(gamma.astype(f32))
    beta_p = jnp.zeros((1, h_pad), f32).at[0, :h].set(beta.astype(f32))

    kernel = _make_kernel(n_pad, te, h)

    grid_spec = pltpu.PrefetchScalarGridSpec(
        num_scalar_prefetch=0,
        grid=(eb,),
        in_specs=[
            pl.BlockSpec((n_pad, h_pad), lambda j: (0, 0)),   # x (resident)
            pl.BlockSpec((te, h_pad),    lambda j: (j, 0)),   # edge features
            pl.BlockSpec((te, 1),        lambda j: (j, 0)),   # senders (column)
            pl.BlockSpec((te, 1),        lambda j: (j, 0)),   # receivers (column)
            pl.BlockSpec((1, te),        lambda j: (0, j)),   # receivers (lane row)
            pl.BlockSpec((h_pad, h_pad), lambda j: (0, 0)),   # Ws
            pl.BlockSpec((h_pad, h_pad), lambda j: (0, 0)),   # Wr
            pl.BlockSpec((h_pad, h_pad), lambda j: (0, 0)),   # We
            pl.BlockSpec((1, h_pad),     lambda j: (0, 0)),   # bias
            pl.BlockSpec((1, h_pad),     lambda j: (0, 0)),   # gamma
            pl.BlockSpec((1, h_pad),     lambda j: (0, 0)),   # beta
        ],
        out_specs=pl.BlockSpec((n_pad, h_pad), lambda j: (0, 0)),
        scratch_shapes=[pltpu.VMEM((2 * n_pad, h_pad), bf16)],   # [x@Ws ; x@Wr]
    )

    flops = int(eb * (2 * te * h_pad * h_pad          # e @ We
                      + 2 * te * (2 * n_pad) * h_pad  # fused one-hot gather+proj
                      + 2 * n_pad * te * h_pad)       # scatter-add
                + 4 * n_pad * h_pad * h_pad           # x@Ws, x@Wr (once)
                + 10 * n_pad * h_pad)                 # residual + LayerNorm
    bytes_accessed = int(8 * n_pad * h_pad            # x (f32) + out (f32)
                         + 2 * e_pad * h_pad          # edge features (bf16)
                         + 6 * h_pad * h_pad          # 3 weights (bf16)
                         + 12 * e_pad + 12 * h_pad)   # index rows + b/gamma/beta
    cost = pl.CostEstimate(flops=flops, transcendentals=int(n_pad),
                           bytes_accessed=bytes_accessed)

    out_p = pl.pallas_call(
        kernel,
        out_shape=jax.ShapeDtypeStruct((n_pad, h_pad), f32),
        grid_spec=grid_spec,
        compiler_params=pltpu.CompilerParams(
            dimension_semantics=("arbitrary",),
            vmem_limit_bytes=_vmem_limit_bytes(),
        ),
        cost_estimate=cost,
    )(x_p, e_p, send_col, recv_col, recv_lane, w_s, w_r, w_e, b_p, g_p, beta_p)

    return out_p[:n, :h]


def reference(x, senders, receivers, edge_feat, W, b, gamma, beta):
    cat = jnp.concatenate([x[senders], x[receivers], edge_feat], axis=-1)
    msg = jnp.maximum(cat @ W.T + b, 0.0)
    aggr = jnp.zeros_like(x).at[receivers].add(msg)
    h = aggr + x
    mean = h.mean(-1, keepdims=True)
    var = ((h - mean) ** 2).mean(-1, keepdims=True)
    return (h - mean) / jnp.sqrt(var + LN_EPS) * gamma + beta


if __name__ == "__main__":
    N, E, H = 16, 256, 32  # nodes, edges, hidden_dim

    key = jax.random.PRNGKey(0)
    k1, k2, k3, k4, k5, k6 = jax.random.split(key, 6)

    x = jax.random.normal(k1, (N, H), dtype=jnp.float32)
    edge_feat = jax.random.normal(k2, (E, H), dtype=jnp.float32)
    senders = jax.random.randint(k3, (E,), 0, N, dtype=jnp.int32)
    receivers = jax.random.randint(k4, (E,), 0, N, dtype=jnp.int32)

    # Deterministic synthetic parameters (not a checkpoint load)
    bound = 1.0 / jnp.sqrt(3.0 * H)
    W = jax.random.uniform(k5, (H, 3 * H), jnp.float32, -bound, bound)
    b = jax.random.uniform(k6, (H,), jnp.float32, -bound, bound)
    gamma = jnp.ones((H,), jnp.float32)   # LayerNorm default init
    beta = jnp.zeros((H,), jnp.float32)

    # te=128 -> grid (2,): exercises accumulator init, multi-step accumulation,
    # edge padding/masking, and the finalize (residual + LayerNorm) path.
    out = sparse_message_passing(x, senders, receivers, edge_feat, W, b,
                                 gamma, beta, te=128)
    out = jax.block_until_ready(out)

    ref = reference(x, senders, receivers, edge_feat, W, b, gamma, beta)
    assert out.shape == (N, H) and out.dtype == jnp.float32
    err = float(jnp.max(jnp.abs(out - ref)))
    # bf16 MXU operands -> ~1e-2 relative error vs the f32 reference is expected.
    assert jnp.allclose(out, ref, atol=5e-2, rtol=5e-2), f"mismatch vs reference: {err}"
    print("KERNEL_OK")
</pallas_src>

<mosaic_0001>
module attributes {stable_mosaic.version = 11 : i64} {
  func.func @kernel(%arg0: i32, %arg1: memref<64x128xf32, #tpu.memory_space<vmem>>, %arg2: memref<128x128xbf16, #tpu.memory_space<vmem>>, %arg3: memref<128x1xi32, #tpu.memory_space<vmem>>, %arg4: memref<128x1xi32, #tpu.memory_space<vmem>>, %arg5: memref<1x128xi32, #tpu.memory_space<vmem>>, %arg6: memref<128x128xbf16, #tpu.memory_space<vmem>>, %arg7: memref<128x128xbf16, #tpu.memory_space<vmem>>, %arg8: memref<128x128xbf16, #tpu.memory_space<vmem>>, %arg9: memref<1x128xf32, #tpu.memory_space<vmem>>, %arg10: memref<1x128xf32, #tpu.memory_space<vmem>>, %arg11: memref<1x128xf32, #tpu.memory_space<vmem>>, %arg12: memref<64x128xf32, #tpu.memory_space<vmem>>, %arg13: memref<128x128xbf16, #tpu.memory_space<vmem>>) attributes {dimension_semantics = [#tpu.dimension_semantics<arbitrary>], iteration_bounds = array<i64: 2>, scalar_prefetch = 0 : i64, scratch_operands = 1 : i64, tpu.core_type = #tpu.core_type<tc>, window_params = [{pipeline_mode = #tpu.pipeline_mode<synchronous>, transform_indices = @transform_0, window_bounds = array<i64: 64, 128>}, {transform_indices = @transform_1, window_bounds = array<i64: 128, 128>}, {transform_indices = @transform_2, window_bounds = array<i64: 128, 1>}, {transform_indices = @transform_3, window_bounds = array<i64: 128, 1>}, {transform_indices = @transform_4, window_bounds = array<i64: 1, 128>}, {pipeline_mode = #tpu.pipeline_mode<synchronous>, transform_indices = @transform_5, window_bounds = array<i64: 128, 128>}, {pipeline_mode = #tpu.pipeline_mode<synchronous>, transform_indices = @transform_6, window_bounds = array<i64: 128, 128>}, {pipeline_mode = #tpu.pipeline_mode<synchronous>, transform_indices = @transform_7, window_bounds = array<i64: 128, 128>}, {pipeline_mode = #tpu.pipeline_mode<synchronous>, transform_indices = @transform_8, window_bounds = array<i64: 1, 128>}, {pipeline_mode = #tpu.pipeline_mode<synchronous>, transform_indices = @transform_9, window_bounds = array<i64: 1, 128>}, {pipeline_mode = #tpu.pipeline_mode<synchronous>, transform_indices = @transform_10, window_bounds = array<i64: 1, 128>}, {pipeline_mode = #tpu.pipeline_mode<synchronous>, transform_indices = @transform_11, window_bounds = array<i64: 64, 128>}]} {
    %c0_i32 = arith.constant 0 : i32
    %0 = arith.cmpi eq, %arg0, %c0_i32 : i32
    %1 = arith.extui %0 : i1 to i32
    %c0_i32_0 = arith.constant 0 : i32
    %2 = arith.cmpi ne, %1, %c0_i32_0 : i32
    scf.if %2 {
      %c0_22 = arith.constant 0 : index
      %c0_23 = arith.constant 0 : index
      %42 = vector.load %arg1[%c0_22, %c0_23] : memref<64x128xf32, #tpu.memory_space<vmem>>, vector<64x128xf32>
      %43 = arith.truncf %42 : vector<64x128xf32> to vector<64x128xbf16>
      %c0_24 = arith.constant 0 : index
      %c0_25 = arith.constant 0 : index
      %44 = vector.load %arg6[%c0_24, %c0_25] : memref<128x128xbf16, #tpu.memory_space<vmem>>, vector<128x128xbf16>
      %cst_26 = arith.constant dense<0.000000e+00> : vector<64x128xf32>
      %45 = tpu.matmul %43, %44, %cst_26 {dimension_numbers = #tpu.dot_dimension_numbers<[1], [0], [0], [1], [0, 0, 1, 1], [], []>} : vector<64x128xbf16>, vector<128x128xbf16>, vector<64x128xf32> -> vector<64x128xf32>
      %46 = arith.truncf %45 : vector<64x128xf32> to vector<64x128xbf16>
      %c0_27 = arith.constant 0 : index
      %c0_28 = arith.constant 0 : index
      %47 = vector.load %arg13[%c0_27, %c0_28] : memref<128x128xbf16, #tpu.memory_space<vmem>>, vector<64x128xbf16>
      tpu.vector_store %arg13[%c0_27, %c0_28], %46 {strides = array<i32>} : memref<128x128xbf16, #tpu.memory_space<vmem>>, vector<64x128xbf16>,
      %c0_29 = arith.constant 0 : index
      %c0_30 = arith.constant 0 : index
      %48 = vector.load %arg7[%c0_29, %c0_30] : memref<128x128xbf16, #tpu.memory_space<vmem>>, vector<128x128xbf16>
      %cst_31 = arith.constant dense<0.000000e+00> : vector<64x128xf32>
      %49 = tpu.matmul %43, %48, %cst_31 {dimension_numbers = #tpu.dot_dimension_numbers<[1], [0], [0], [1], [0, 0, 1, 1], [], []>} : vector<64x128xbf16>, vector<128x128xbf16>, vector<64x128xf32> -> vector<64x128xf32>
      %50 = arith.truncf %49 : vector<64x128xf32> to vector<64x128xbf16>
      %c64 = arith.constant 64 : index
      %c0_32 = arith.constant 0 : index
      %51 = vector.load %arg13[%c64, %c0_32] : memref<128x128xbf16, #tpu.memory_space<vmem>>, vector<64x128xbf16>
      tpu.vector_store %arg13[%c64, %c0_32], %50 {strides = array<i32>} : memref<128x128xbf16, #tpu.memory_space<vmem>>, vector<64x128xbf16>,
      %cst_33 = arith.constant 0.000000e+00 : f32
      %52 = vector.broadcast %cst_33 : f32 to vector<64x128xf32>
      %c0_34 = arith.constant 0 : index
      %c0_35 = arith.constant 0 : index
      %53 = vector.load %arg12[%c0_34, %c0_35] : memref<64x128xf32, #tpu.memory_space<vmem>>, vector<64x128xf32>
      tpu.vector_store %arg12[%c0_34, %c0_35], %52 {strides = array<i32>} : memref<64x128xf32, #tpu.memory_space<vmem>>, vector<64x128xf32>,
    } else {
    }
    %c0 = arith.constant 0 : index
    %c0_1 = arith.constant 0 : index
    %3 = vector.load %arg2[%c0, %c0_1] : memref<128x128xbf16, #tpu.memory_space<vmem>>, vector<128x128xbf16>
    %c0_2 = arith.constant 0 : index
    %c0_3 = arith.constant 0 : index
    %4 = vector.load %arg8[%c0_2, %c0_3] : memref<128x128xbf16, #tpu.memory_space<vmem>>, vector<128x128xbf16>
    %cst = arith.constant dense<0.000000e+00> : vector<128x128xf32>
    %5 = tpu.matmul %3, %4, %cst {dimension_numbers = #tpu.dot_dimension_numbers<[1], [0], [0], [1], [0, 0, 1, 1], [], []>} : vector<128x128xbf16>, vector<128x128xbf16>, vector<128x128xf32> -> vector<128x128xf32>
    %6 = tpu.iota {dimensions = array<i32: 1>} : vector<128x128xi32>
    %c0_4 = arith.constant 0 : index
    %c0_5 = arith.constant 0 : index
    %7 = vector.load %arg3[%c0_4, %c0_5] : memref<128x1xi32, #tpu.memory_space<vmem>>, vector<128x1xi32>
    %8 = vector.broadcast %7 : vector<128x1xi32> to vector<128x128xi32>
    %9 = arith.cmpi eq, %6, %8 : vector<128x128xi32>
    %c0_6 = arith.constant 0 : index
    %c0_7 = arith.constant 0 : index
    %10 = vector.load %arg4[%c0_6, %c0_7] : memref<128x1xi32, #tpu.memory_space<vmem>>, vector<128x1xi32>
    %c64_i32 = arith.constant 64 : i32
    %11 = vector.broadcast %c64_i32 : i32 to vector<128x1xi32>
    %12 = arith.addi %10, %11 : vector<128x1xi32>
    %13 = vector.broadcast %12 : vector<128x1xi32> to vector<128x128xi32>
    %14 = arith.cmpi eq, %6, %13 : vector<128x128xi32>
    %15 = arith.ori %9, %14 : vector<128x128xi1>
    %16 = arith.extui %15 : vector<128x128xi1> to vector<128x128xi32>
    %17 = arith.sitofp %16 : vector<128x128xi32> to vector<128x128xf32>
    %18 = arith.truncf %17 : vector<128x128xf32> to vector<128x128xbf16>
    %c0_8 = arith.constant 0 : index
    %c0_9 = arith.constant 0 : index
    %19 = vector.load %arg13[%c0_8, %c0_9] : memref<128x128xbf16, #tpu.memory_space<vmem>>, vector<128x128xbf16>
    %cst_10 = arith.constant dense<0.000000e+00> : vector<128x128xf32>
    %20 = tpu.matmul %18, %19, %cst_10 {dimension_numbers = #tpu.dot_dimension_numbers<[1], [0], [0], [1], [0, 0, 1, 1], [], []>} : vector<128x128xbf16>, vector<128x128xbf16>, vector<128x128xf32> -> vector<128x128xf32>
    %21 = arith.addf %5, %20 : vector<128x128xf32>
    %c0_11 = arith.constant 0 : index
    %c0_12 = arith.constant 0 : index
    %22 = vector.load %arg9[%c0_11, %c0_12] : memref<1x128xf32, #tpu.memory_space<vmem>>, vector<1x128xf32>
    %23 = vector.broadcast %22 : vector<1x128xf32> to vector<128x128xf32>
    %24 = arith.addf %21, %23 : vector<128x128xf32>
    %cst_13 = arith.constant 0.000000e+00 : f32
    %25 = vector.broadcast %cst_13 : f32 to vector<128x128xf32>
    %26 = arith.maximumf %24, %25 : vector<128x128xf32>
    %27 = tpu.iota {dimensions = array<i32: 0>} : vector<64x128xi32>
    %c0_14 = arith.constant 0 : index
    %c0_15 = arith.constant 0 : index
    %28 = vector.load %arg5[%c0_14, %c0_15] : memref<1x128xi32, #tpu.memory_space<vmem>>, vector<1x128xi32>
    %29 = vector.broadcast %28 : vector<1x128xi32> to vector<64x128xi32>
    %30 = arith.cmpi eq, %27, %29 : vector<64x128xi32>
    %31 = arith.extui %30 : vector<64x128xi1> to vector<64x128xi32>
    %32 = arith.sitofp %31 : vector<64x128xi32> to vector<64x128xf32>
    %33 = arith.truncf %32 : vector<64x128xf32> to vector<64x128xbf16>
    %c0_16 = arith.constant 0 : index
    %c0_17 = arith.constant 0 : index
    %34 = vector.load %arg12[%c0_16, %c0_17] : memref<64x128xf32, #tpu.memory_space<vmem>>, vector<64x128xf32>
    %35 = arith.truncf %26 : vector<128x128xf32> to vector<128x128xbf16>
    %cst_18 = arith.constant dense<0.000000e+00> : vector<64x128xf32>
    %36 = tpu.matmul %33, %35, %cst_18 {dimension_numbers = #tpu.dot_dimension_numbers<[1], [0], [0], [1], [0, 0, 1, 1], [], []>} : vector<64x128xbf16>, vector<128x128xbf16>, vector<64x128xf32> -> vector<64x128xf32>
    %37 = arith.addf %34, %36 : vector<64x128xf32>
    %c0_19 = arith.constant 0 : index
    %c0_20 = arith.constant 0 : index
    %38 = vector.load %arg12[%c0_19, %c0_20] : memref<64x128xf32, #tpu.memory_space<vmem>>, vector<64x128xf32>
    tpu.vector_store %arg12[%c0_19, %c0_20], %37 {strides = array<i32>} : memref<64x128xf32, #tpu.memory_space<vmem>>, vector<64x128xf32>,
    %c1_i32 = arith.constant 1 : i32
    %39 = arith.cmpi eq, %arg0, %c1_i32 : i32
    %40 = arith.extui %39 : i1 to i32
    %c0_i32_21 = arith.constant 0 : i32
    %41 = arith.cmpi ne, %40, %c0_i32_21 : i32
    scf.if %41 {
      %c0_22 = arith.constant 0 : index
      %c0_23 = arith.constant 0 : index
      %42 = vector.load %arg12[%c0_22, %c0_23] : memref<64x128xf32, #tpu.memory_space<vmem>>, vector<64x128xf32>
      %c0_24 = arith.constant 0 : index
      %c0_25 = arith.constant 0 : index
      %43 = vector.load %arg1[%c0_24, %c0_25] : memref<64x128xf32, #tpu.memory_space<vmem>>, vector<64x128xf32>
      %44 = arith.addf %42, %43 : vector<64x128xf32>
      %45 = tpu.iota {dimensions = array<i32: 1>} : vector<64x128xi32>
      %c32_i32 = arith.constant 32 : i32
      %46 = vector.broadcast %c32_i32 : i32 to vector<64x128xi32>
      %47 = arith.cmpi slt, %45, %46 : vector<64x128xi32>
      %cst_26 = arith.constant 0.000000e+00 : f32
      %48 = vector.broadcast %cst_26 : f32 to vector<64x128xf32>
      %49 = arith.select %47, %44, %48 : vector<64x128xi1>, vector<64x128xf32>
      %cst_27 = arith.constant dense<0.000000e+00> : vector<64xf32>
      %50 = vector.multi_reduction <add>, %49, %cst_27 [1] : vector<64x128xf32> to vector<64xf32>
      %51 = vector.shape_cast %50 : vector<64xf32> to vector<64x1xf32>
      %cst_28 = arith.constant 3.125000e-02 : f32
      %52 = vector.broadcast %cst_28 : f32 to vector<64x1xf32>
      %53 = arith.mulf %51, %52 : vector<64x1xf32>
      %54 = vector.broadcast %53 : vector<64x1xf32> to vector<64x128xf32>
      %55 = arith.subf %44, %54 : vector<64x128xf32>
      %cst_29 = arith.constant 0.000000e+00 : f32
      %56 = vector.broadcast %cst_29 : f32 to vector<64x128xf32>
      %57 = arith.select %47, %55, %56 : vector<64x128xi1>, vector<64x128xf32>
      %58 = arith.mulf %57, %57 : vector<64x128xf32>
      %cst_30 = arith.constant dense<0.000000e+00> : vector<64xf32>
      %59 = vector.multi_reduction <add>, %58, %cst_30 [1] : vector<64x128xf32> to vector<64xf32>
      %60 = vector.shape_cast %59 : vector<64xf32> to vector<64x1xf32>
      %cst_31 = arith.constant 3.125000e-02 : f32
      %61 = vector.broadcast %cst_31 : f32 to vector<64x1xf32>
      %62 = arith.mulf %60, %61 : vector<64x1xf32>
      %cst_32 = arith.constant 9.99999974E-6 : f32
      %63 = vector.broadcast %cst_32 : f32 to vector<64x1xf32>
      %64 = arith.addf %62, %63 : vector<64x1xf32>
      %65 = math.rsqrt %64 : vector<64x1xf32>
      %66 = vector.broadcast %65 : vector<64x1xf32> to vector<64x128xf32>
      %67 = arith.mulf %57, %66 : vector<64x128xf32>
      %c0_33 = arith.constant 0 : index
      %c0_34 = arith.constant 0 : index
      %68 = vector.load %arg10[%c0_33, %c0_34] : memref<1x128xf32, #tpu.memory_space<vmem>>, vector<1x128xf32>
      %69 = vector.broadcast %68 : vector<1x128xf32> to vector<64x128xf32>
      %70 = arith.mulf %67, %69 : vector<64x128xf32>
      %c0_35 = arith.constant 0 : index
      %c0_36 = arith.constant 0 : index
      %71 = vector.load %arg11[%c0_35, %c0_36] : memref<1x128xf32, #tpu.memory_space<vmem>>, vector<1x128xf32>
      %72 = vector.broadcast %71 : vector<1x128xf32> to vector<64x128xf32>
      %73 = arith.addf %70, %72 : vector<64x128xf32>
      %c0_37 = arith.constant 0 : index
      %c0_38 = arith.constant 0 : index
      %74 = vector.load %arg12[%c0_37, %c0_38] : memref<64x128xf32, #tpu.memory_space<vmem>>, vector<64x128xf32>
      tpu.vector_store %arg12[%c0_37, %c0_38], %73 {strides = array<i32>} : memref<64x128xf32, #tpu.memory_space<vmem>>, vector<64x128xf32>,
    } else {
    }
    return
  }
  func.func @transform_0(%arg0: i32) -> (i32, i32) {
    %c0_i32 = arith.constant 0 : i32
    %c0_i32_0 = arith.constant 0 : i32
    %c0_i32_1 = arith.constant 0 : i32
    return %c0_i32, %c0_i32_0 : i32, i32
  }
  func.func @transform_1(%arg0: i32) -> (i32, i32) {
    %c0_i32 = arith.constant 0 : i32
    %c0_i32_0 = arith.constant 0 : i32
    return %arg0, %c0_i32 : i32, i32
  }
  func.func @transform_2(%arg0: i32) -> (i32, i32) {
    %c0_i32 = arith.constant 0 : i32
    %c0_i32_0 = arith.constant 0 : i32
    return %arg0, %c0_i32 : i32, i32
  }
  func.func @transform_3(%arg0: i32) -> (i32, i32) {
    %c0_i32 = arith.constant 0 : i32
    %c0_i32_0 = arith.constant 0 : i32
    return %arg0, %c0_i32 : i32, i32
  }
  func.func @transform_4(%arg0: i32) -> (i32, i32) {
    %c0_i32 = arith.constant 0 : i32
    %c0_i32_0 = arith.constant 0 : i32
    return %c0_i32, %arg0 : i32, i32
  }
  func.func @transform_5(%arg0: i32) -> (i32, i32) {
    %c0_i32 = arith.constant 0 : i32
    %c0_i32_0 = arith.constant 0 : i32
    %c0_i32_1 = arith.constant 0 : i32
    return %c0_i32, %c0_i32_0 : i32, i32
  }
  func.func @transform_6(%arg0: i32) -> (i32, i32) {
    %c0_i32 = arith.constant 0 : i32
    %c0_i32_0 = arith.constant 0 : i32
    %c0_i32_1 = arith.constant 0 : i32
    return %c0_i32, %c0_i32_0 : i32, i32
  }
  func.func @transform_7(%arg0: i32) -> (i32, i32) {
    %c0_i32 = arith.constant 0 : i32
    %c0_i32_0 = arith.constant 0 : i32
    %c0_i32_1 = arith.constant 0 : i32
    return %c0_i32, %c0_i32_0 : i32, i32
  }
  func.func @transform_8(%arg0: i32) -> (i32, i32) {
    %c0_i32 = arith.constant 0 : i32
    %c0_i32_0 = arith.constant 0 : i32
    %c0_i32_1 = arith.constant 0 : i32
    return %c0_i32, %c0_i32_0 : i32, i32
  }
  func.func @transform_9(%arg0: i32) -> (i32, i32) {
    %c0_i32 = arith.constant 0 : i32
    %c0_i32_0 = arith.constant 0 : i32
    %c0_i32_1 = arith.constant 0 : i32
    return %c0_i32, %c0_i32_0 : i32, i32
  }
  func.func @transform_10(%arg0: i32) -> (i32, i32) {
    %c0_i32 = arith.constant 0 : i32
    %c0_i32_0 = arith.constant 0 : i32
    %c0_i32_1 = arith.constant 0 : i32
    return %c0_i32, %c0_i32_0 : i32, i32
  }
  func.func @transform_11(%arg0: i32) -> (i32, i32) {
    %c0_i32 = arith.constant 0 : i32
    %c0_i32_0 = arith.constant 0 : i32
    %c0_i32_1 = arith.constant 0 : i32
    return %c0_i32, %c0_i32_0 : i32, i32
  }
}

</mosaic_0001>

<bundles_post_ra>
// kernel: tpu_custom_call.1
= control target key start
LH: loop header
LB: loop body
LE: loop exit
PB: predicated region body
PF: predicated region fallthrough
CT: control target
= control target key end

     0   :  { %16 = vsyncpa [#allocation4], 0  ;;  %s2236_s17 = smov 0   ;;  %s2656_s0 = inlined_call_operand.vmem [shape: f32[64,128], index: 0, kind: input, shape index: {}]   ;;  %s2657_s1 = inlined_call_operand.vmem [shape: bf16[256,128], index: 1, kind: input, shape index: {}]   ;;  %s2658_s2 = inlined_call_operand.vmem [shape: s32[256,1], index: 2, kind: input, shape index: {}]   ;;  %s2659_s3 = inlined_call_operand.vmem [shape: s32[256,1], index: 3, kind: input, shape index: {}]   ;;  %s2660_s4 = inlined_call_operand.vmem [shape: s32[1,256], index: 4, kind: input, shape index: {}]   ;;  %s2661_s5 = inlined_call_operand.vmem [shape: bf16[128,128], index: 5, kind: input, shape index: {}]   ;;  %s2662_s6 = inlined_call_operand.vmem [shape: bf16[128,128], index: 6, kind: input, shape index: {}]   ;;  %s2663_s7 = inlined_call_operand.vmem [shape: bf16[128,128], index: 7, kind: input, shape index: {}]   ;;  %s2664_s8 = inlined_call_operand.vmem [shape: f32[1,128], index: 8, kind: input, shape index: {}]   ;;  %s2665_s9 = inlined_call_operand.vmem [shape: f32[1,128], index: 9, kind: input, shape index: {}]   ;;  %s2666_s10 = inlined_call_operand.vmem [shape: f32[1,128], index: 10, kind: input, shape index: {}]   ;;  %s2667_s11 = inlined_call_operand.hbm [shape: f32[64,128], index: 11, kind: output, shape index: {}]  }
   0x1 LB: > { %s2242_s18 = sadd.s32 4294967295, %s2168_s17   ;;  %p1729_p0 = scmp.ge.s32.totalorder %s2168_s17, 1  ;;  %s2168_s17 = sphi %s2236_s17, %s22_s17  }
   0x2   : > { %p364_p1 = scmp.lt.s32.totalorder %s2168_s17, 3 }
   0x4   : > { %p365_p2 = pnand %p1729_p0, %p364_p1 }
   0x5   : > { %s1730_s19 = sshll.u32 (!%p365_p2), %s2242_s18, 4  ;;  %p430_p3 = scmp.lt.s32.totalorder (!%p365_p2), %s2242_s18, 1 }
   0x6   : > { %368 = sbr.rel (%p365_p2) target bundleno = 1282 (0x502), region = 64  ;;  %p413_p4 = scmp.lt.s32.totalorder (!%p365_p2), %s1730_s19, 31 }
   0x7   : > { %p1736_p5 = scmp.ne.s32.totalorder (!%p365_p2), %s2242_s18, 0 }
   0xd   : > { %s2249_s20 = scalar_select %p430_p3, %s2242_s18, 1 }
   0xe   : > { %s2673_s19 = smov (!%p413_p4, %s1730_s19), 31  ;;  %437 = sbr.rel (%p1736_p5) target bundleno = 275 (0x113), region = 68 }
   0xf   : > { %s432_s23 = scalar_lea.vmem %s2660_s4, %s2249_s20  ;;  %s1731_s24 = sshll.u32 %s2673_s19, 2  ;;  %v2082_v0 = vld [vmem:[%s2661_s5] sm:$0xff] (!%p1736_p5)   ;;  %v2084_v2 = vld [vmem:[%s2661_s5 + $0x8] sm:$0xff] (!%p1736_p5)   ;;  %v2086_v4 = vld [vmem:[%s2661_s5 + $0x10] sm:$0xff] (!%p1736_p5)   ;;  %v2170_v28 = vmov (!%p1736_p5), 0.0  }
  0x10   : > { %s1733_s25 = sshll.u32 %s2673_s19, 3  ;;  %s2258_s28 = scalar_lea.vmem %s2657_s1, %s1731_s24  ;;  %v2083_v1 = vld [vmem:[%s2662_s6] sm:$0xff] (!%p1736_p5)   ;;  %1894 = vmatprep.subr.bf16.mxu0 (!%p1736_p5), %v2082_v0  ;;  %v2085_v3 = vld [vmem:[%s2662_s6 + $0x8] sm:$0xff] (!%p1736_p5)   ;;  %v2087_v5 = vld [vmem:[%s2662_s6 + $0x10] sm:$0xff] (!%p1736_p5)   ;;  %724 = vst [vmem:[#allocation3] sm:$0xff] (!%p1736_p5), %v2170_v28 }
  0x11   : > { %s2263_s12 = scalar_lea.vmem %s2658_s2, %s1733_s25  ;;  %s2268_s15 = scalar_lea.vmem %s2659_s3, %s1733_s25  ;;  %1918 = vmatprep.subr.bf16.mxu1 (!%p1736_p5), %v2083_v1  ;;  %1895 = vmatpush3.bf16.msra.mxu0 (!%p1736_p5), %v2082_v0  ;;  %v2088_v6 = vld [vmem:[%s2661_s5 + $0x18] sm:$0xff] (!%p1736_p5)   ;;  %v2090_v8 = vld [vmem:[%s2661_s5 + $0x20] sm:$0xff] (!%p1736_p5)   ;;  %v2092_v10 = vld [vmem:[%s2661_s5 + $0x28] sm:$0xff] (!%p1736_p5)   ;;  %725 = vst [vmem:[#allocation3 + $0x8] sm:$0xff] (!%p1736_p5), %v2170_v28 }
  0x12   : > { %1919 = vmatpush3.bf16.msra.mxu1 (!%p1736_p5), %v2083_v1  ;;  %1896 = vmatprep.subr.bf16.mxu0 (!%p1736_p5), %v2084_v2  ;;  %v2089_v7 = vld [vmem:[%s2662_s6 + $0x18] sm:$0xff] (!%p1736_p5)   ;;  %v2091_v9 = vld [vmem:[%s2662_s6 + $0x20] sm:$0xff] (!%p1736_p5)   ;;  %v439_v12 = vld [vmem:[%s2656_s0 + $0x8] sm:$0xff] (!%p1736_p5)  ;;  %726 = vst [vmem:[#allocation3 + $0x10] sm:$0xff] (!%p1736_p5), %v2170_v28 }
  0x13   : > { %1920 = vmatprep.subr.bf16.mxu1 (!%p1736_p5), %v2085_v3  ;;  %v438_v11 = vld [vmem:[%s2656_s0] sm:$0xff] (!%p1736_p5)  ;;  %v2093_v13 = vld [vmem:[%s2662_s6 + $0x28] sm:$0xff] (!%p1736_p5)   ;;  %v2094_v15 = vld [vmem:[%s2661_s5 + $0x30] sm:$0xff] (!%p1736_p5)   ;;  %727 = vst [vmem:[#allocation3 + $0x18] sm:$0xff] (!%p1736_p5), %v2170_v28 }
  0x14   : > { %v446_v14 = vpack.c.bf16 (!%p1736_p5), %v439_v12, %v438_v11  ;;  %v2095_v16 = vld [vmem:[%s2662_s6 + $0x30] sm:$0xff] (!%p1736_p5)   ;;  %v2096_v17 = vld [vmem:[%s2661_s5 + $0x38] sm:$0xff] (!%p1736_p5)   ;;  %v442_v21 = vld [vmem:[%s2656_s0 + $0x20] sm:$0xff] (!%p1736_p5)  ;;  %728 = vst [vmem:[#allocation3 + $0x20] sm:$0xff] (!%p1736_p5), %v2170_v28 }
  0x15   : > { %1897 = vmatpush3.bf16.msra.mxu0 %v2084_v2  ;;  %v2097_v18 = vld [vmem:[%s2662_s6 + $0x38] sm:$0xff]   ;;  %v440_v19 = vld [vmem:[%s2656_s0 + $0x10] sm:$0xff]  ;;  %v443_v22 = vld [vmem:[%s2656_s0 + $0x28] sm:$0xff]  ;;  %729 = vst [vmem:[#allocation3 + $0x28] sm:$0xff] %v2170_v28 }
  0x16   : > { %1921 = vmatpush3.bf16.msra.mxu1 %v2085_v3  ;;  %1898 = vmatprep.subr.bf16.mxu0 %v2086_v4  ;;  %v441_v20 = vld [vmem:[%s2656_s0 + $0x18] sm:$0xff]  ;;  %v448_v24 = vpack.c.bf16 %v443_v22, %v442_v21  ;;  %v444_v25 = vld [vmem:[%s2656_s0 + $0x30] sm:$0xff]  ;;  %730 = vst [vmem:[#allocation3 + $0x30] sm:$0xff] %v2170_v28  ;;  %731 = vst [vmem:[#allocation3 + $0x38] sm:$0xff] %v2170_v28 }
  0x17   : > { %1922 = vmatprep.subr.bf16.mxu1 %v2087_v5  ;;  %1910 = vmatprep.mubr.bf16.mxu0 %v446_v14  ;;  %v447_v23 = vpack.c.bf16 %v441_v20, %v440_v19  ;;  %v445_v26 = vld [vmem:[%s2656_s0 + $0x38] sm:$0xff] }
  0x18   : > { %1934 = vmatprep.mubr.bf16.mxu1 %v446_v14  ;;  %v449_v27 = vpack.c.bf16 %v445_v26, %v444_v25 }
  0x19   : > { %1899 = vmatpush3.bf16.msra.mxu0 %v2086_v4 }
  0x1a   : > { %1923 = vmatpush3.bf16.msra.mxu1 %v2087_v5  ;;  %1900 = vmatprep.subr.bf16.mxu0 %v2088_v6 }
  0x1b   : > { %1924 = vmatprep.subr.bf16.mxu1 %v2089_v7 }
  0x1d   : > { %1901 = vmatpush3.bf16.msra.mxu0 %v2088_v6 }
  0x1e   : > { %1925 = vmatpush3.bf16.msra.mxu1 %v2089_v7  ;;  %1902 = vmatprep.subr.bf16.mxu0 %v2090_v8 }
  0x1f   : > { %1926 = vmatprep.subr.bf16.mxu1 %v2091_v9 }
  0x21   : > { %1903 = vmatpush3.bf16.msra.mxu0 %v2090_v8 }
  0x22   : > { %1927 = vmatpush3.bf16.msra.mxu1 %v2091_v9  ;;  %1904 = vmatprep.subr.bf16.mxu0 %v2092_v10 }
  0x23   : > { %1928 = vmatprep.subr.bf16.mxu1 %v2093_v13 }
  0x25   : > { %1905 = vmatpush3.bf16.msra.mxu0 %v2092_v10 }
  0x26   : > { %1929 = vmatpush3.bf16.msra.mxu1 %v2093_v13  ;;  %1906 = vmatprep.subr.bf16.mxu0 %v2094_v15 }
  0x27   : > { %1930 = vmatprep.subr.bf16.mxu1 %v2095_v16 }
  0x29   : > { %1907 = vmatpush3.bf16.msra.mxu0 %v2094_v15 }
  0x2a   : > { %1931 = vmatpush3.bf16.msra.mxu1 %v2095_v16  ;;  %1908 = vmatprep.subr.bf16.mxu0 %v2096_v17 }
  0x2b   : > { %1932 = vmatprep.subr.bf16.mxu1 %v2097_v18 }
  0x2d   : > { %1909 = vmatpush3.bf16.msra.mxu0 %v2096_v17 }
  0x2e   : > { %1933 = vmatpush3.bf16.msra.mxu1 %v2097_v18 }
  0x30   : > { %1911 = vmatmul.mubr.bf16.vlgmr.msra.gmra.mrb[0].mxu0 %v447_v23 }
  0x31   : > { %1935 = vmatmul.mubr.bf16.vlgmr.msra.gmra.mrb[0].mxu1 %v447_v23  ;;  %1914 = vmatprep.mubr.bf16.mxu0 %v448_v24 }
  0x32   : > { %1938 = vmatprep.mubr.bf16.mxu1 %v448_v24 }
  0x38   : > { %1915 = vmatmul.mubr.bf16.gmra.mrb[4].mxu0 %v449_v27 }
  0x39   : > { %1939 = vmatmul.mubr.bf16.gmra.mrb[4].mxu1 %v449_v27 }
 0x103   : > { %v1912_v29 = vpop.f32.mrb[0].mxu0 }
 0x104   : > { %v1936_v30 = vpop.f32.mrb[0].mxu1  ;;  %v548_v31 = vpop.f32.mrb[1].mxu0 }
 0x105   : > { %v685_v32 = vpop.f32.mrb[1].mxu1  ;;  %v1913_v33 = vpop.f32.mrb[2].mxu0 }
 0x106   : > { %v580_v34 = vpack.c.bf16 %v1913_v33, %v1912_v29  ;;  %v1937_v35 = vpop.f32.mrb[2].mxu1  ;;  %v551_v36 = vpop.f32.mrb[3].mxu0 }
 0x107   : > { %v717_v37 = vpack.c.bf16 %v1937_v35, %v1936_v30  ;;  %v579_v38 = vpack.c.bf16 %v551_v36, %v548_v31  ;;  %v688_v39 = vpop.f32.mrb[3].mxu1 }
 0x108   : > { %584 = vst [vmem:[#allocation2 + $0x8] sm:$0xff] %v580_v34  ;;  %v716_v40 = vpack.c.bf16 %v688_v39, %v685_v32 }
 0x109   : > { %721 = vst [vmem:[#allocation2 + $0x28] sm:$0xff] %v717_v37  ;;  %583 = vst [vmem:[#allocation2] sm:$0xff] %v579_v38 }
 0x10a   : > { %720 = vst [vmem:[#allocation2 + $0x20] sm:$0xff] %v716_v40 }
 0x10b   : > { %v1916_v41 = vpop.f32.mrb[4].mxu0 }
 0x10c   : > { %v1940_v42 = vpop.f32.mrb[4].mxu1  ;;  %v564_v43 = vpop.f32.mrb[5].mxu0 }
 0x10d   : > { %v701_v44 = vpop.f32.mrb[5].mxu1  ;;  %v1917_v45 = vpop.f32.mrb[6].mxu0 }
 0x10e   : > { %v582_v46 = vpack.c.bf16 %v1917_v45, %v1916_v41  ;;  %v1941_v47 = vpop.f32.mrb[6].mxu1  ;;  %v567_v48 = vpop.f32.mrb[7].mxu0 }
 0x10f   : > { %v719_v49 = vpack.c.bf16 %v1941_v47, %v1940_v42  ;;  %v581_v50 = vpack.c.bf16 %v567_v48, %v564_v43  ;;  %v704_v51 = vpop.f32.mrb[7].mxu1 }
 0x110   : > { %586 = vst [vmem:[#allocation2 + $0x18] sm:$0xff] %v582_v46  ;;  %v718_v52 = vpack.c.bf16 %v704_v51, %v701_v44 }
 0x111   : > { %723 = vst [vmem:[#allocation2 + $0x38] sm:$0xff] %v719_v49  ;;  %585 = vst [vmem:[#allocation2 + $0x10] sm:$0xff] %v581_v50 }
 0x112   : > { %722 = vst [vmem:[#allocation2 + $0x30] sm:$0xff] %v718_v52 }
 0x113 PF: > { %v766_v53 = vld [vmem:[%s2263_s12] sm:$0xff]  ;;  %v2171_v55 = vmov 0   ;;  %v847_v57 = vld [vmem:[%s2268_s15 + $0x8] sm:$0xff]  ;;  %v768_v60 = vld [vmem:[%s2263_s12 + $0x10] sm:$0xff]  ;;  %p1819_p6 = scmp.ne.s32.totalorder %s2242_s18, 1 }
 0x114   : > { %v846_v54 = vld [vmem:[%s2268_s15] sm:$0xff]  ;;  %2098 = vset.pattern.permute.xlu0 %v2171_v55  ;;  %2099 = vset.pattern.permute.xlu1 %v2171_v55  ;;  %v767_v58 = vld [vmem:[%s2263_s12 + $0x8] sm:$0xff]  ;;  %v863_v59 = vadd.s32 64, %v847_v57  ;;  %v848_v61 = vld [vmem:[%s2268_s15 + $0x10] sm:$0xff] }
 0x115   : > { %v862_v56 = vadd.s32 64, %v846_v54  ;;  %783 = vperm.xlu0 %2098, %v766_v53   ;;  %v769_v62 = vld [vmem:[%s2263_s12 + $0x18] sm:$0xff]  ;;  %v864_v0 = vadd.s32 64, %v848_v61  ;;  %v998_v1 = vld [vmem:[#allocation2] sm:$0xff]  ;;  %v999_v4 = vld [vmem:[#allocation2 + $0x8] sm:$0xff] }
 0x116   : > { %v849_v63 = vld [vmem:[%s2268_s15 + $0x18] sm:$0xff]  ;;  %1942 = vmatprep.subr.bf16.mxu1 %v998_v1  ;;  %v2100_v3 = vld [vmem:[%s2663_s7] sm:$0xff]   ;;  %v2101_v6 = vld [vmem:[%s2663_s7 + $0x8] sm:$0xff]  }
 0x117   : > { %879 = vperm.xlu1 %2099, %v862_v56   ;;  %v865_v2 = vadd.s32 64, %v849_v63  ;;  %1943 = vmatpush3.bf16.msra.mxu1 %v998_v1  ;;  %v770_v5 = vld [vmem:[%s2263_s12 + $0x20] sm:$0xff]  ;;  %v771_v7 = vld [vmem:[%s2263_s12 + $0x28] sm:$0xff]  ;;  %v2102_v11 = vld [vmem:[%s2663_s7 + $0x10] sm:$0xff]  }
 0x118   : > { %1944 = vmatprep.subr.bf16.mxu1 %v999_v4  ;;  %1974 = vmatprep.subr.bf16.mxu0 %v2100_v3  ;;  %v1000_v8 = vld [vmem:[#allocation2 + $0x10] sm:$0xff]  ;;  %v850_v9 = vld [vmem:[%s2268_s15 + $0x20] sm:$0xff]  ;;  %v851_v10 = vld [vmem:[%s2268_s15 + $0x28] sm:$0xff] }
 0x119   : > { %786 = vperm.xlu0 %2098, %v767_v58   ;;  %1975 = vmatpush3.bf16.msra.mxu0 %v2100_v3  ;;  %v866_v12 = vadd.s32 64, %v850_v9  ;;  %v1001_v13 = vld [vmem:[#allocation2 + $0x18] sm:$0xff]  ;;  %v867_v14 = vadd.s32 64, %v851_v10  ;;  %v852_v15 = vld [vmem:[%s2268_s15 + $0x30] sm:$0xff]  ;;  %v1002_v18 = vld [vmem:[#allocation2 + $0x20] sm:$0xff] }
 0x11a   : > { %1976 = vmatprep.subr.bf16.mxu0 %v2101_v6  ;;  %v2103_v16 = vld [vmem:[%s2663_s7 + $0x18] sm:$0xff]   ;;  %v772_v17 = vld [vmem:[%s2263_s12 + $0x30] sm:$0xff]  ;;  %v2108_v21 = vld [vmem:[%s2258_s28] sm:$0xff]   ;;  %v868_v22 = vadd.s32 64, %v852_v15 }
 0x11b   : > { %882 = vperm.xlu1 %2099, %v863_v59   ;;  %1945 = vmatpush3.bf16.msra.mxu1 %v999_v4  ;;  %v773_v19 = vld [vmem:[%s2263_s12 + $0x38] sm:$0xff]  ;;  %v2104_v23 = vld [vmem:[%s2663_s7 + $0x20] sm:$0xff]   ;;  %v1003_v24 = vld [vmem:[#allocation2 + $0x28] sm:$0xff] }
 0x11c   : > { %1946 = vmatprep.subr.bf16.mxu1 %v1000_v8  ;;  %v853_v20 = vld [vmem:[%s2268_s15 + $0x38] sm:$0xff]  ;;  %1990 = vmatprep.mubr.bf16.mxu0 %v2108_v21  ;;  %v2105_v26 = vld [vmem:[%s2663_s7 + $0x28] sm:$0xff]   ;;  %v1004_v27 = vld [vmem:[#allocation2 + $0x30] sm:$0xff] }
 0x11d   : > { %789 = vperm.xlu0 %2098, %v768_v60   ;;  %1977 = vmatpush3.bf16.msra.mxu0 %v2101_v6  ;;  %v869_v25 = vadd.s32 64, %v853_v20  ;;  %v774_v28 = vld [vmem:[%s2263_s12 + $0x40] sm:$0xff]  ;;  %v775_v30 = vld [vmem:[%s2263_s12 + $0x48] sm:$0xff]  ;;  %v2106_v32 = vld [vmem:[%s2663_s7 + $0x30] sm:$0xff]   ;;  %v2172_v6 = vmov 1.0|1.0  }
 0x11e   : > { %1978 = vmatprep.subr.bf16.mxu0 %v2102_v11  ;;  %v854_v29 = vld [vmem:[%s2268_s15 + $0x40] sm:$0xff]  ;;  %v855_v31 = vld [vmem:[%s2268_s15 + $0x48] sm:$0xff]  ;;  %v1005_v34 = vld [vmem:[#allocation2 + $0x38] sm:$0xff] }
 0x11f   : > { %792 = vperm.xlu1 %2099, %v769_v62   ;;  %1947 = vmatpush3.bf16.msra.mxu1 %v1000_v8  ;;  %v870_v33 = vadd.s32 64, %v854_v29  ;;  %v871_v35 = vadd.s32 64, %v855_v31  ;;  %v2107_v36 = vld [vmem:[%s2663_s7 + $0x38] sm:$0xff]   ;;  %v776_v37 = vld [vmem:[%s2263_s12 + $0x50] sm:$0xff]  ;;  %v2109_v42 = vld [vmem:[%s2258_s28 + $0x8] sm:$0xff]   ;;  %v764_v62 = vlaneseq }
 0x120   : > { %1948 = vmatprep.subr.bf16.mxu1 %v1001_v13  ;;  %v856_v38 = vld [vmem:[%s2268_s15 + $0x50] sm:$0xff]  ;;  %v777_v39 = vld [vmem:[%s2263_s12 + $0x58] sm:$0xff]  ;;  %v778_v45 = vld [vmem:[%s2263_s12 + $0x60] sm:$0xff] }
 0x121   : > { %885 = vperm.xlu0 %2098, %v864_v0   ;;  %1979 = vmatpush3.bf16.msra.mxu0 %v2102_v11  ;;  %v857_v40 = vld [vmem:[%s2268_s15 + $0x58] sm:$0xff]  ;;  %v872_v41 = vadd.s32 64, %v856_v38  ;;  %v2110_v44 = vld [vmem:[%s2258_s28 + $0x10] sm:$0xff]   ;;  %v858_v46 = vld [vmem:[%s2268_s15 + $0x60] sm:$0xff]  ;;  %v2408_v63 = vand.u32 127, %v764_v62 }
 0x122   : > { %1980 = vmatprep.subr.bf16.mxu0 %v2103_v16  ;;  %v873_v43 = vadd.s32 64, %v857_v40  ;;  %v779_v47 = vld [vmem:[%s2263_s12 + $0x68] sm:$0xff]  ;;  %v874_v49 = vadd.s32 64, %v858_v46  ;;  %v2111_v50 = vld [vmem:[%s2258_s28 + $0x18] sm:$0xff]   ;;  %v2112_v52 = vld [vmem:[%s2258_s28 + $0x20] sm:$0xff]  }
 0x123   : > { %888 = vperm.xlu1 %2099, %v865_v2   ;;  %1949 = vmatpush3.bf16.msra.mxu1 %v1001_v13  ;;  %v859_v48 = vld [vmem:[%s2268_s15 + $0x68] sm:$0xff]  ;;  %v780_v53 = vld [vmem:[%s2263_s12 + $0x70] sm:$0xff]  ;;  %v781_v55 = vld [vmem:[%s2263_s12 + $0x78] sm:$0xff] }
 0x124   : > { %1950 = vmatprep.subr.bf16.mxu1 %v1002_v18  ;;  %v875_v51 = vadd.s32 64, %v859_v48  ;;  %v860_v54 = vld [vmem:[%s2268_s15 + $0x70] sm:$0xff]  ;;  %v861_v56 = vld [vmem:[%s2268_s15 + $0x78] sm:$0xff]  ;;  %v2113_v58 = vld [vmem:[%s2258_s28 + $0x28] sm:$0xff]  }
 0x125   : > { %795 = vperm.xlu0 %2098, %v770_v5   ;;  %1981 = vmatpush3.bf16.msra.mxu0 %v2103_v16  ;;  %v876_v57 = vadd.s32 64, %v860_v54  ;;  %v877_v59 = vadd.s32 64, %v861_v56  ;;  %v2114_v60 = vld [vmem:[%s2258_s28 + $0x30] sm:$0xff]   ;;  %v2115_v61 = vld [vmem:[%s2258_s28 + $0x38] sm:$0xff]  }
 0x126   : > { %1982 = vmatprep.subr.bf16.mxu0 %v2104_v23 }
 0x127   : > { %798 = vperm.xlu1 %2099, %v771_v7   ;;  %1951 = vmatpush3.bf16.msra.mxu1 %v1002_v18 }
 0x128   : > { %1952 = vmatprep.subr.bf16.mxu1 %v1003_v24 }
 0x129   : > { %891 = vperm.xlu0 %2098, %v866_v12   ;;  %1983 = vmatpush3.bf16.msra.mxu0 %v2104_v23 }
 0x12a   : > { %1984 = vmatprep.subr.bf16.mxu0 %v2105_v26 }
 0x12b   : > { %894 = vperm.xlu1 %2099, %v867_v14   ;;  %1953 = vmatpush3.bf16.msra.mxu1 %v1003_v24 }
 0x12c   : > { %1954 = vmatprep.subr.bf16.mxu1 %v1004_v27 }
 0x12d   : > { %801 = vperm.xlu0 %2098, %v772_v17   ;;  %1985 = vmatpush3.bf16.msra.mxu0 %v2105_v26 }
 0x12e   : > { %1986 = vmatprep.subr.bf16.mxu0 %v2106_v32 }
 0x12f   : > { %804 = vperm.xlu1 %2099, %v773_v19   ;;  %1955 = vmatpush3.bf16.msra.mxu1 %v1004_v27 }
 0x130   : > { %1956 = vmatprep.subr.bf16.mxu1 %v1005_v34 }
 0x131   : > { %897 = vperm.xlu0 %2098, %v868_v22   ;;  %1987 = vmatpush3.bf16.msra.mxu0 %v2106_v32 }
 0x132   : > { %1988 = vmatprep.subr.bf16.mxu0 %v2107_v36 }
 0x133   : > { %900 = vperm.xlu1 %2099, %v869_v25   ;;  %1957 = vmatpush3.bf16.msra.mxu1 %v1005_v34 }
 0x135   : > { %807 = vperm.xlu0 %2098, %v774_v28   ;;  %1989 = vmatpush3.bf16.msra.mxu0 %v2107_v36 }
 0x137   : > { %810 = vperm.xlu1 %2099, %v775_v30  }
 0x138   : > { %1991 = vmatmul.mubr.bf16.vlgmr.msra.gmra.mrb[0].mxu0 %v2109_v42 }
 0x139   : > { %903 = vperm.xlu0 %2098, %v870_v33   ;;  %1994 = vmatprep.mubr.bf16.mxu0 %v2110_v44 }
 0x13b   : > { %906 = vperm.xlu1 %2099, %v871_v35  }
 0x13d   : > { %813 = vperm.xlu0 %2098, %v776_v37  }
 0x13f   : > { %816 = vperm.xlu1 %2099, %v777_v39  }
 0x140   : > { %1995 = vmatmul.mubr.bf16.gmra.mrb[4].mxu0 %v2111_v50 }
 0x141   : > { %909 = vperm.xlu0 %2098, %v872_v41   ;;  %1998 = vmatprep.mubr.bf16.mxu0 %v2112_v52 }
 0x143   : > { %912 = vperm.xlu1 %2099, %v873_v43  }
 0x145   : > { %819 = vperm.xlu0 %2098, %v778_v45  }
 0x147   : > { %822 = vperm.xlu1 %2099, %v779_v47  }
 0x148   : > { %1999 = vmatmul.mubr.bf16.gmra.mrb[8].mxu0 %v2113_v58 }
 0x149   : > { %915 = vperm.xlu0 %2098, %v874_v49   ;;  %2002 = vmatprep.mubr.bf16.mxu0 %v2114_v60  ;;  %v1336_v49 = vshrl.u32 %v764_v62, 7 }
 0x14b   : > { %918 = vperm.xlu1 %2099, %v875_v51   ;;  %v1337_v50 = vadd.s32 8, %v1336_v49  ;;  %v1340_v51 = vadd.s32 32, %v1336_v49  ;;  %v1341_v52 = vadd.s32 40, %v1336_v49  ;;  %v1338_v54 = vadd.s32 16, %v1336_v49 }
 0x14c   : > { %v1342_v56 = vadd.s32 48, %v1336_v49 }
 0x14d   : > { %825 = vperm.xlu0 %2098, %v780_v53   ;;  %v1802_v53 = vld [vmem:[%s432_s23] ss:$0 sm:$0xff] }
 0x14f   : > { %828 = vperm.xlu1 %2099, %v781_v55   ;;  %v1339_v55 = vadd.s32 24, %v1336_v49 }
 0x150   : > { %2003 = vmatmul.mubr.bf16.gmra.mrb[12].mxu0 %v2115_v61  ;;  %v2491_v61 = vld [vmem:[%s2664_s8] ss:$0 sm:$0xff] }
 0x151   : > { %921 = vperm.xlu0 %2098, %v876_v57   ;;  %v1343_v57 = vadd.s32 56, %v1336_v49 }
 0x153   : > { %924 = vperm.xlu1 %2099, %v877_v59  }
 0x194   : > { %v784_v0 = vpop.permute.xlu0 %783 }
 0x195   : > { %vm830_vm0 = vcmp.eq.s32.totalorder %v2408_v63, %v784_v0 }
 0x196   : > { %v880_v1 = vpop.permute.xlu1 %879 }
 0x197   : > { %vm926_vm1 = vcmp.eq.s32.totalorder %v2408_v63, %v880_v1 }
 0x198   : > { %v787_v2 = vpop.permute.xlu0 %786  ;;  %vm942_vm4 = vmor %vm830_vm0, %vm926_vm1 }
 0x199   : > { %vm831_vm2 = vcmp.eq.s32.totalorder %v2408_v63, %v787_v2 }
 0x19a   : > { %v883_v3 = vpop.permute.xlu1 %882 }
 0x19b   : > { %vm927_vm3 = vcmp.eq.s32.totalorder %v2408_v63, %v883_v3 }
 0x19c   : > { %vm943_vm5 = vmor %vm831_vm2, %vm927_vm3  ;;  %v790_v4 = vpop.permute.xlu0 %789 }
 0x19d   : > { %vm1769_vm6 = vmpackc.low %vm943_vm5, %vm942_vm4  ;;  %vm832_vm7 = vcmp.eq.s32.totalorder %v2408_v63, %v790_v4 }
 0x19e   : > { %v793_v5 = vpop.permute.xlu1 %792  ;;  %1958 = vmatprep.mubr.msk.bf16.mxu1 %vm1769_vm6, %v2172_v6 }
 0x19f   : > { %vm833_vm9 = vcmp.eq.s32.totalorder %v2408_v63, %v793_v5 }
 0x1a0   : > { %v886_v7 = vpop.permute.xlu0 %885 }
 0x1a1   : > { %vm928_vm8 = vcmp.eq.s32.totalorder %v2408_v63, %v886_v7 }
 0x1a2   : > { %v889_v8 = vpop.permute.xlu1 %888  ;;  %vm944_vm10 = vmor %vm832_vm7, %vm928_vm8 }
 0x1a3   : > { %vm929_vm11 = vcmp.eq.s32.totalorder %v2408_v63, %v889_v8 }
 0x1a4   : > { %vm945_vm12 = vmor %vm833_vm9, %vm929_vm11  ;;  %v796_v9 = vpop.permute.xlu0 %795 }
 0x1a5   : > { %vm1771_vm13 = vmpackc.low %vm945_vm12, %vm944_vm10  ;;  %vm834_vm14 = vcmp.eq.s32.totalorder %v2408_v63, %v796_v9 }
 0x1a6   : > { %v799_v10 = vpop.permute.xlu1 %798  ;;  %1959 = vmatmul.mubr.msk.bf16.vlgmr.msra.gmra.mrb[0].mxu1 %vm1771_vm13, %v2172_v6 }
 0x1a7   : > { %vm835_vm0 = vcmp.eq.s32.totalorder %v2408_v63, %v799_v10 }
 0x1a8   : > { %v892_v11 = vpop.permute.xlu0 %891 }
 0x1a9   : > { %vm930_vm15 = vcmp.eq.s32.totalorder %v2408_v63, %v892_v11 }
 0x1aa   : > { %v895_v12 = vpop.permute.xlu1 %894  ;;  %vm946_vm1 = vmor %vm834_vm14, %vm930_vm15 }
 0x1ab   : > { %vm931_vm2 = vcmp.eq.s32.totalorder %v2408_v63, %v895_v12 }
 0x1ac   : > { %vm947_vm3 = vmor %vm835_vm0, %vm931_vm2  ;;  %v802_v13 = vpop.permute.xlu0 %801 }
 0x1ad   : > { %vm1773_vm4 = vmpackc.low %vm947_vm3, %vm946_vm1  ;;  %vm836_vm5 = vcmp.eq.s32.totalorder %v2408_v63, %v802_v13 }
 0x1ae   : > { %v805_v14 = vpop.permute.xlu1 %804  ;;  %1962 = vmatprep.mubr.msk.bf16.mxu1 %vm1773_vm4, %v2172_v6 }
 0x1af   : > { %vm837_vm7 = vcmp.eq.s32.totalorder %v2408_v63, %v805_v14 }
 0x1b0   : > { %v898_v15 = vpop.permute.xlu0 %897 }
 0x1b1   : > { %vm932_vm6 = vcmp.eq.s32.totalorder %v2408_v63, %v898_v15 }
 0x1b2   : > { %v901_v16 = vpop.permute.xlu1 %900  ;;  %vm948_vm8 = vmor %vm836_vm5, %vm932_vm6 }
 0x1b3   : > { %vm933_vm9 = vcmp.eq.s32.totalorder %v2408_v63, %v901_v16 }
 0x1b4   : > { %vm949_vm10 = vmor %vm837_vm7, %vm933_vm9  ;;  %v808_v17 = vpop.permute.xlu0 %807 }
 0x1b5   : > { %vm1775_vm11 = vmpackc.low %vm949_vm10, %vm948_vm8  ;;  %vm838_vm12 = vcmp.eq.s32.totalorder %v2408_v63, %v808_v17 }
 0x1b6   : > { %v811_v18 = vpop.permute.xlu1 %810  ;;  %1963 = vmatmul.mubr.msk.bf16.gmra.mrb[4].mxu1 %vm1775_vm11, %v2172_v6 }
 0x1b7   : > { %vm839_vm14 = vcmp.eq.s32.totalorder %v2408_v63, %v811_v18 }
 0x1b8   : > { %v904_v19 = vpop.permute.xlu0 %903 }
 0x1b9   : > { %vm934_vm13 = vcmp.eq.s32.totalorder %v2408_v63, %v904_v19 }
 0x1ba   : > { %v907_v20 = vpop.permute.xlu1 %906  ;;  %vm950_vm15 = vmor %vm838_vm12, %vm934_vm13 }
 0x1bb   : > { %vm935_vm0 = vcmp.eq.s32.totalorder %v2408_v63, %v907_v20 }
 0x1bc   : > { %vm951_vm1 = vmor %vm839_vm14, %vm935_vm0  ;;  %v814_v21 = vpop.permute.xlu0 %813 }
 0x1bd   : > { %vm1777_vm2 = vmpackc.low %vm951_vm1, %vm950_vm15  ;;  %vm840_vm3 = vcmp.eq.s32.totalorder %v2408_v63, %v814_v21 }
 0x1be   : > { %v817_v22 = vpop.permute.xlu1 %816  ;;  %1966 = vmatprep.mubr.msk.bf16.mxu1 %vm1777_vm2, %v2172_v6 }
 0x1bf   : > { %vm841_vm5 = vcmp.eq.s32.totalorder %v2408_v63, %v817_v22 }
 0x1c0   : > { %v910_v23 = vpop.permute.xlu0 %909 }
 0x1c1   : > { %vm936_vm4 = vcmp.eq.s32.totalorder %v2408_v63, %v910_v23 }
 0x1c2   : > { %v913_v24 = vpop.permute.xlu1 %912  ;;  %vm952_vm6 = vmor %vm840_vm3, %vm936_vm4 }
 0x1c3   : > { %vm937_vm7 = vcmp.eq.s32.totalorder %v2408_v63, %v913_v24 }
 0x1c4   : > { %vm953_vm8 = vmor %vm841_vm5, %vm937_vm7  ;;  %v820_v25 = vpop.permute.xlu0 %819 }
 0x1c5   : > { %vm1779_vm9 = vmpackc.low %vm953_vm8, %vm952_vm6  ;;  %vm842_vm10 = vcmp.eq.s32.totalorder %v2408_v63, %v820_v25  ;;  %vm1349_vm8 = vcmp.eq.s32.totalorder %v1336_v49, %v1802_v53 }
 0x1c6   : > { %v823_v26 = vpop.permute.xlu1 %822  ;;  %1967 = vmatmul.mubr.msk.bf16.gmra.mrb[8].mxu1 %vm1779_vm9, %v2172_v6  ;;  %vm1350_vm9 = vcmp.eq.s32.totalorder %v1337_v50, %v1802_v53 }
 0x1c7   : > { %vm843_vm12 = vcmp.eq.s32.totalorder %v2408_v63, %v823_v26 }
 0x1c8   : > { %v916_v27 = vpop.permute.xlu0 %915 }
 0x1c9   : > { %vm938_vm11 = vcmp.eq.s32.totalorder %v2408_v63, %v916_v27 }
 0x1ca   : > { %v919_v28 = vpop.permute.xlu1 %918  ;;  %vm954_vm13 = vmor %vm842_vm10, %vm938_vm11  ;;  %vm1353_vm10 = vcmp.eq.s32.totalorder %v1340_v51, %v1802_v53  ;;  %vm1354_vm11 = vcmp.eq.s32.totalorder %v1341_v52, %v1802_v53 }
 0x1cb   : > { %vm939_vm14 = vcmp.eq.s32.totalorder %v2408_v63, %v919_v28 }
 0x1cc   : > { %vm955_vm15 = vmor %vm843_vm12, %vm939_vm14  ;;  %v826_v29 = vpop.permute.xlu0 %825  ;;  %vm1352_vm14 = vcmp.eq.s32.totalorder %v1339_v55, %v1802_v53 }
 0x1cd   : > { %vm1781_vm0 = vmpackc.low %vm955_vm15, %vm954_vm13  ;;  %vm844_vm1 = vcmp.eq.s32.totalorder %v2408_v63, %v826_v29  ;;  %vm1351_vm13 = vcmp.eq.s32.totalorder %v1338_v54, %v1802_v53  ;;  %vm1355_vm15 = vcmp.eq.s32.totalorder %v1342_v56, %v1802_v53 }
 0x1ce   : > { %v829_v30 = vpop.permute.xlu1 %828  ;;  %1970 = vmatprep.mubr.msk.bf16.mxu1 %vm1781_vm0, %v2172_v6  ;;  %vm1811_vm12 = vmpackc.low %vm1350_vm9, %vm1349_vm8  ;;  %vm1356_vm0 = vcmp.eq.s32.totalorder %v1343_v57, %v1802_v53 }
 0x1cf   : > { %vm845_vm3 = vcmp.eq.s32.totalorder %v2408_v63, %v829_v30  ;;  %2022 = vmatprep.mubr.msk.bf16.mxu0 %vm1811_vm12, %v2172_v6 }
 0x1d0   : > { %v922_v31 = vpop.permute.xlu0 %921 }
 0x1d1   : > { %vm940_vm2 = vcmp.eq.s32.totalorder %v2408_v63, %v922_v31 }
 0x1d2   : > { %v925_v32 = vpop.permute.xlu1 %924  ;;  %vm956_vm4 = vmor %vm844_vm1, %vm940_vm2 }
 0x1d3   : > { %vm941_vm5 = vcmp.eq.s32.totalorder %v2408_v63, %v925_v32  ;;  %vm1815_vm1 = vmpackc.low %vm1354_vm11, %vm1353_vm10 }
 0x1d4   : > { %vm957_vm6 = vmor %vm845_vm3, %vm941_vm5 }
 0x1d5   : > { %vm1783_vm7 = vmpackc.low %vm957_vm6, %vm956_vm4  ;;  %vm1502_vm4 = vcmp.lt.s32.totalorder (!%p1819_p6), %v2408_v63, 32 }
 0x1d6   : > { %1971 = vmatmul.mubr.msk.bf16.gmra.mrb[12].mxu1 %vm1783_vm7, %v2172_v6  ;;  %vm2480_vm2 = vmpackc.low %vm1352_vm14, %vm1351_vm13 }
 0x1d7   : > { %2026 = vmatprep.mubr.msk.bf16.mxu1 %vm1815_vm1, %v2172_v6  ;;  %vm2484_vm3 = vmpackc.low %vm1356_vm0, %vm1355_vm15 }
 0x20b   : > { %v1992_v33 = vpop.f32.mrb[0].mxu0 }
 0x20c   : > { %v1233_v34 = vpop.f32.mrb[1].mxu0 }
 0x20d   : > { %v1993_v35 = vpop.f32.mrb[2].mxu0 }
 0x20e   : > { %v1236_v36 = vpop.f32.mrb[3].mxu0 }
 0x213   : > { %v1996_v37 = vpop.f32.mrb[4].mxu0 }
 0x214   : > { %v2450_v38 = vpop.f32.mrb[5].mxu0 }
 0x215   : > { %v2452_v39 = vpop.f32.mrb[6].mxu0 }
 0x216   : > { %v2454_v40 = vpop.f32.mrb[7].mxu0 }
 0x21b   : > { %v2456_v41 = vpop.f32.mrb[8].mxu0 }
 0x21c   : > { %v2458_v42 = vpop.f32.mrb[9].mxu0 }
 0x21d   : > { %v2460_v43 = vpop.f32.mrb[10].mxu0 }
 0x21e   : > { %v2462_v44 = vpop.f32.mrb[11].mxu0 }
 0x223   : > { %v2464_v45 = vpop.f32.mrb[12].mxu0 }
 0x224   : > { %v2466_v46 = vpop.f32.mrb[13].mxu0 }
 0x225   : > { %v2468_v47 = vpop.f32.mrb[14].mxu0 }
 0x226   : > { %v2470_v48 = vpop.f32.mrb[15].mxu0 }
 0x279   : > { %v1960_v60 = vpop.f32.mrb[0].mxu1 }
 0x27a   : > { %v1242_v62 = vadd.f32 %v1992_v33, %v1960_v60  ;;  %v1040_v0 = vpop.f32.mrb[1].mxu1 }
 0x27b   : > { %v1234_v1 = vadd.f32 %v1233_v34, %v1040_v0  ;;  %v1961_v2 = vpop.f32.mrb[2].mxu1 }
 0x27c   : > { %v1305_v3 = vadd.f32 %v2491_v61, %v1242_v62  ;;  %v1245_v4 = vadd.f32 %v1993_v35, %v1961_v2  ;;  %v1043_v5 = vpop.f32.mrb[3].mxu1 }
 0x27d   : > { %v1303_v7 = vadd.f32 %v2491_v61, %v1234_v1  ;;  %v1237_v8 = vadd.f32 %v1236_v36, %v1043_v5 }
 0x27e   : > { %v1306_v9 = vadd.f32 %v2491_v61, %v1245_v4  ;;  %v1321_v11 = vmax.f32 %v1305_v3, 0.0 }
 0x27f   : > { %v1304_v10 = vadd.f32 %v2491_v61, %v1237_v8  ;;  %v1319_v13 = vmax.f32 %v1303_v7, 0.0 }
 0x280   : > { %v1322_v12 = vmax.f32 %v1306_v9, 0.0 }
 0x281   : > { %v1320_v14 = vmax.f32 %v1304_v10, 0.0 }
 0x282   : > { %v1386_v15 = vpack.c.bf16 %v1322_v12, %v1321_v11 }
 0x283   : > { %v1385_v16 = vpack.c.bf16 %v1320_v14, %v1319_v13  ;;  %v1381_v14 = vld [vmem:[#allocation3 + $0x20] sm:$0xff] }
 0x285   : > { %2006 = vmatprep.subr.bf16.mxu0 %v1385_v16  ;;  %2030 = vmatprep.subr.bf16.mxu1 %v1385_v16 }
 0x286   : > { %2007 = vmatpush3.bf16.msra.mxu0 %v1385_v16  ;;  %2038 = vmatpush3.bf16.msra.mxu1 %v1385_v16 }
 0x287   : > { %2008 = vmatprep.subr.bf16.mxu0 %v1386_v15  ;;  %2031 = vmatprep.subr.bf16.mxu1 %v1386_v15 }
 0x289   : > { %v1964_v17 = vpop.f32.mrb[4].mxu1 }
 0x28a   : > { %v1258_v18 = vadd.f32 %v1996_v37, %v1964_v17  ;;  %v1056_v19 = vpop.f32.mrb[5].mxu1  ;;  %2009 = vmatpush3.bf16.msra.mxu0 %v1386_v15  ;;  %2039 = vmatpush3.bf16.msra.mxu1 %v1386_v15  ;;  %v1380_v17 = vld [vmem:[#allocation3 + $0x18] sm:$0xff] }
 0x28b   : > { %v1250_v20 = vadd.f32 %v2450_v38, %v1056_v19  ;;  %v1965_v21 = vpop.f32.mrb[6].mxu1 }
 0x28c   : > { %v1309_v22 = vadd.f32 %v2491_v61, %v1258_v18  ;;  %v1261_v23 = vadd.f32 %v2452_v39, %v1965_v21  ;;  %v1059_v24 = vpop.f32.mrb[7].mxu1  ;;  %v1384_v18 = vld [vmem:[#allocation3 + $0x38] sm:$0xff] }
 0x28d   : > { %v1307_v25 = vadd.f32 %v2491_v61, %v1250_v20  ;;  %v1253_v26 = vadd.f32 %v2454_v40, %v1059_v24  ;;  %v1382_v24 = vld [vmem:[#allocation3 + $0x28] sm:$0xff] }
 0x28e   : > { %v1310_v27 = vadd.f32 %v2491_v61, %v1261_v23  ;;  %v1325_v29 = vmax.f32 %v1309_v22, 0.0  ;;  %v1378_v23 = vld [vmem:[#allocation3 + $0x8] sm:$0xff] }
 0x28f   : > { %v1308_v28 = vadd.f32 %v2491_v61, %v1253_v26  ;;  %v1323_v31 = vmax.f32 %v1307_v25, 0.0 }
 0x290   : > { %v1326_v30 = vmax.f32 %v1310_v27, 0.0 }
 0x291   : > { %v1324_v32 = vmax.f32 %v1308_v28, 0.0 }
 0x292   : > { %v1388_v33 = vpack.c.bf16 %v1326_v30, %v1325_v29 }
 0x293   : > { %v1387_v34 = vpack.c.bf16 %v1324_v32, %v1323_v31 }
 0x295   : > { %2010 = vmatprep.subr.bf16.mxu0 %v1387_v34  ;;  %2032 = vmatprep.subr.bf16.mxu1 %v1387_v34 }
 0x296   : > { %2011 = vmatpush3.bf16.msra.mxu0 %v1387_v34  ;;  %2040 = vmatpush3.bf16.msra.mxu1 %v1387_v34 }
 0x297   : > { %2012 = vmatprep.subr.bf16.mxu0 %v1388_v33  ;;  %2033 = vmatprep.subr.bf16.mxu1 %v1388_v33 }
 0x299   : > { %v1968_v35 = vpop.f32.mrb[8].mxu1 }
 0x29a   : > { %v1274_v36 = vadd.f32 %v2456_v41, %v1968_v35  ;;  %v1072_v37 = vpop.f32.mrb[9].mxu1  ;;  %2013 = vmatpush3.bf16.msra.mxu0 %v1388_v33  ;;  %2041 = vmatpush3.bf16.msra.mxu1 %v1388_v33  ;;  %v1486_v33 = vld [vmem:[%s2656_s0] sm:$0xff] (!%p1819_p6) }
 0x29b   : > { %v1266_v38 = vadd.f32 %v2458_v42, %v1072_v37  ;;  %v1969_v39 = vpop.f32.mrb[10].mxu1 }
 0x29c   : > { %v1313_v40 = vadd.f32 %v2491_v61, %v1274_v36  ;;  %v1277_v49 = vadd.f32 %v2460_v43, %v1969_v39  ;;  %v1075_v50 = vpop.f32.mrb[11].mxu1  ;;  %v1488_v36 = vld [vmem:[%s2656_s0 + $0x10] sm:$0xff] (!%p1819_p6) }
 0x29d   : > { %v1311_v51 = vadd.f32 %v2491_v61, %v1266_v38  ;;  %v1269_v52 = vadd.f32 %v2462_v44, %v1075_v50  ;;  %v1487_v38 = vld [vmem:[%s2656_s0 + $0x8] sm:$0xff] (!%p1819_p6)  ;;  %v1489_v50 = vld [vmem:[%s2656_s0 + $0x18] sm:$0xff] (!%p1819_p6) }
 0x29e   : > { %v1314_v53 = vadd.f32 %v2491_v61, %v1277_v49  ;;  %v1329_v41 = vmax.f32 %v1313_v40, 0.0 }
 0x29f   : > { %v1312_v54 = vadd.f32 %v2491_v61, %v1269_v52  ;;  %v1327_v56 = vmax.f32 %v1311_v51, 0.0 }
 0x2a0   : > { %v1330_v55 = vmax.f32 %v1314_v53, 0.0 }
 0x2a1   : > { %v1328_v57 = vmax.f32 %v1312_v54, 0.0  ;;  %v1490_v54 = vld [vmem:[%s2656_s0 + $0x20] sm:$0xff] (!%p1819_p6) }
 0x2a2   : > { %v1390_v60 = vpack.c.bf16 %v1330_v55, %v1329_v41  ;;  %v1491_v55 = vld [vmem:[%s2656_s0 + $0x28] sm:$0xff] (!%p1819_p6) }
 0x2a3   : > { %v1389_v42 = vpack.c.bf16 %v1328_v57, %v1327_v56 }
 0x2a5   : > { %2014 = vmatprep.subr.bf16.mxu0 %v1389_v42  ;;  %2034 = vmatprep.subr.bf16.mxu1 %v1389_v42 }
 0x2a6   : > { %2015 = vmatpush3.bf16.msra.mxu0 %v1389_v42  ;;  %2042 = vmatpush3.bf16.msra.mxu1 %v1389_v42 }
 0x2a7   : > { %2016 = vmatprep.subr.bf16.mxu0 %v1390_v60  ;;  %2035 = vmatprep.subr.bf16.mxu1 %v1390_v60 }
 0x2a9   : > { %v1972_v43 = vpop.f32.mrb[12].mxu1 }
 0x2aa   : > { %v1290_v62 = vadd.f32 %v2464_v45, %v1972_v43  ;;  %v1088_v44 = vpop.f32.mrb[13].mxu1  ;;  %2017 = vmatpush3.bf16.msra.mxu0 %v1390_v60  ;;  %2043 = vmatpush3.bf16.msra.mxu1 %v1390_v60 }
 0x2ab   : > { %v1282_v0 = vadd.f32 %v2466_v46, %v1088_v44  ;;  %v1973_v1 = vpop.f32.mrb[14].mxu1  ;;  %v1492_v44 = vld [vmem:[%s2656_s0 + $0x30] sm:$0xff] (!%p1819_p6) }
 0x2ac   : > { %v1317_v2 = vadd.f32 %v2491_v61, %v1290_v62  ;;  %v1293_v3 = vadd.f32 %v2468_v47, %v1973_v1  ;;  %v1091_v4 = vpop.f32.mrb[15].mxu1  ;;  %v1379_v47 = vld [vmem:[#allocation3 + $0x10] sm:$0xff]  ;;  %v1493_v1 = vld [vmem:[%s2656_s0 + $0x38] sm:$0xff] (!%p1819_p6) }
 0x2ad   : > { %v1315_v5 = vadd.f32 %v2491_v61, %v1282_v0  ;;  %v1285_v7 = vadd.f32 %v2470_v48, %v1091_v4  ;;  %v1383_v48 = vld [vmem:[#allocation3 + $0x30] sm:$0xff] }
 0x2ae   : > { %v1318_v8 = vadd.f32 %v2491_v61, %v1293_v3  ;;  %v1333_v45 = vmax.f32 %v1317_v2, 0.0 }
 0x2af   : > { %v1316_v9 = vadd.f32 %v2491_v61, %v1285_v7  ;;  %v1331_v11 = vmax.f32 %v1315_v5, 0.0  ;;  %v1377_v61 = vld [vmem:[#allocation3] sm:$0xff] }
 0x2b0   : > { %v1334_v10 = vmax.f32 %v1318_v8, 0.0 }
 0x2b1   : > { %v1332_v12 = vmax.f32 %v1316_v9, 0.0 }
 0x2b2   : > { %v1392_v13 = vpack.c.bf16 %v1334_v10, %v1333_v45 }
 0x2b3   : > { %v1391_v46 = vpack.c.bf16 %v1332_v12, %v1331_v11 }
 0x2b5   : > { %2018 = vmatprep.subr.bf16.mxu0 %v1391_v46  ;;  %2036 = vmatprep.subr.bf16.mxu1 %v1391_v46 }
 0x2b6   : > { %2019 = vmatpush3.bf16.msra.mxu0 %v1391_v46  ;;  %2044 = vmatpush3.bf16.msra.mxu1 %v1391_v46 }
 0x2b7   : > { %2020 = vmatprep.subr.bf16.mxu0 %v1392_v13  ;;  %2037 = vmatprep.subr.bf16.mxu1 %v1392_v13 }
 0x2ba   : > { %2021 = vmatpush3.bf16.msra.mxu0 %v1392_v13  ;;  %2045 = vmatpush3.bf16.msra.mxu1 %v1392_v13 }
 0x2bd   : > { %2023 = vmatmul.mubr.msk.bf16.vlgmr.msra.gmra.mrb[16].mxu0 %vm2480_vm2, %v2172_v6  ;;  %2027 = vmatmul.mubr.msk.bf16.vlgmr.msra.gmra.mrb[16].mxu1 %vm2484_vm3, %v2172_v6 }
 0x390   : > { %v2024_v15 = vpop.f32.mrb[16].mxu0  ;;  %v2028_v16 = vpop.f32.mrb[16].mxu1  ;;  %1477 = sbr.rel (%p1819_p6) target bundleno = 1256 (0x4e8), region = 72 }
 0x391   : > { %v1460_v19 = vadd.f32 %v2024_v15, %v1379_v47  ;;  %v1464_v20 = vadd.f32 %v2028_v16, %v1383_v48  ;;  %v1427_v21 = vpop.f32.mrb[17].mxu0  ;;  %v1443_v22 = vpop.f32.mrb[17].mxu1 }
 0x392   : > { %v1458_v58 = vadd.f32 %v1427_v21, %v1377_v61  ;;  %v1462_v25 = vadd.f32 %v1443_v22, %v1381_v14  ;;  %v2025_v26 = vpop.f32.mrb[18].mxu0  ;;  %v2029_v27 = vpop.f32.mrb[18].mxu1 }
 0x393   : > { %1468 = vst [vmem:[#allocation3 + $0x10] sm:$0xff] %v1460_v19  ;;  %1472 = vst [vmem:[#allocation3 + $0x30] sm:$0xff] %v1464_v20  ;;  %v1461_v6 = vadd.f32 %v2025_v26, %v1380_v17  ;;  %v1465_v59 = vadd.f32 %v2029_v27, %v1384_v18  ;;  %v1430_v28 = vpop.f32.mrb[19].mxu0  ;;  %v1446_v29 = vpop.f32.mrb[19].mxu1 }
 0x394   : > { %1466 = vst [vmem:[#allocation3] sm:$0xff] %v1458_v58  ;;  %1470 = vst [vmem:[#allocation3 + $0x20] sm:$0xff] %v1462_v25  ;;  %v1459_v30 = vadd.f32 %v1430_v28, %v1378_v23  ;;  %v1463_v31 = vadd.f32 %v1446_v29, %v1382_v24 }
 0x395   : > { %1469 = vst [vmem:[#allocation3 + $0x18] sm:$0xff] %v1461_v6  ;;  %1473 = vst [vmem:[#allocation3 + $0x38] sm:$0xff] %v1465_v59 }
 0x396   : > { %1467 = vst [vmem:[#allocation3 + $0x8] sm:$0xff] %v1459_v30  ;;  %1471 = vst [vmem:[#allocation3 + $0x28] sm:$0xff] %v1463_v31 }
 0x39a   : > { %v1480_v34 = vld [vmem:[#allocation3 + $0x10] sm:$0xff] }
 0x39b   : > { %v1478_v32 = vld [vmem:[#allocation3] sm:$0xff]  ;;  %v1496_v39 = vadd.f32 %v1488_v36, %v1480_v34  ;;  %v1484_v62 = vld [vmem:[#allocation3 + $0x30] sm:$0xff] }
 0x39c   : > { %v1494_v35 = vadd.f32 %v1486_v33, %v1478_v32  ;;  %v1481_v49 = vld [vmem:[#allocation3 + $0x18] sm:$0xff]  ;;  %v1482_v51 = vld [vmem:[#allocation3 + $0x20] sm:$0xff]  ;;  %v1500_v3 = vadd.f32 %v1492_v44, %v1484_v62 }
 0x39d   : > { %v1479_v37 = vld [vmem:[#allocation3 + $0x8] sm:$0xff]  ;;  %v1497_v53 = vadd.f32 %v1489_v50, %v1481_v49  ;;  %v1505_v56 = vsel %vm1502_vm4, %v1496_v39, 0.0  ;;  %v1498_v60 = vadd.f32 %v1490_v54, %v1482_v51  ;;  %v1485_v0 = vld [vmem:[#allocation3 + $0x38] sm:$0xff] }
 0x39e   : > { %v1495_v40 = vadd.f32 %v1487_v38, %v1479_v37  ;;  %v1503_v52 = vsel %vm1502_vm4, %v1494_v35, 0.0  ;;  %v1483_v41 = vld [vmem:[#allocation3 + $0x28] sm:$0xff]  ;;  %1515 = vadd.xlane.f32.xlu1 %v1505_v56  ;;  %v1501_v5 = vadd.f32 %v1493_v1, %v1485_v0  ;;  %v1509_v7 = vsel %vm1502_vm4, %v1500_v3, 0.0 }
 0x39f   : > { %1511 = vadd.xlane.f32.xlu0 %v1503_v52  ;;  %v1506_v42 = vsel %vm1502_vm4, %v1497_v53, 0.0  ;;  %v1499_v43 = vadd.f32 %v1491_v55, %v1483_v41  ;;  %v1507_v2 = vsel %vm1502_vm4, %v1498_v60, 0.0 }
 0x3a0   : > { %v1504_v57 = vsel %vm1502_vm4, %v1495_v40, 0.0  ;;  %v1510_v8 = vsel %vm1502_vm4, %v1501_v5, 0.0 }
 0x3a1   : > { %v1508_v4 = vsel %vm1502_vm4, %v1499_v43, 0.0 }
 0x3a2   : > { %1517 = vadd.xlane.f32.xlu1 %v1506_v42 }
 0x3a3   : > { %1513 = vadd.xlane.f32.xlu0 %v1504_v57 }
 0x3a6   : > { %1521 = vadd.xlane.f32.xlu1 %v1508_v4  ;;  %v1820_v4 = vld [vmem:[%s2665_s9] ss:$0 sm:$0xff] }
 0x3a7   : > { %1519 = vadd.xlane.f32.xlu0 %v1507_v2 }
 0x3aa   : > { %1525 = vadd.xlane.f32.xlu1 %v1510_v8 }
 0x3ab   : > { %1523 = vadd.xlane.f32.xlu0 %v1509_v7 }
 0x42b   : > { %v1516_v10 = vpop.xlane.xlu1 %1515 }
 0x42c   : > { %v1512_v9 = vpop.xlane.xlu0 %1511  ;;  %v1529_v11 = vmul.f32 0.03125, %v1516_v10 }
 0x42d   : > { %v1527_v45 = vmul.f32 0.03125, %v1512_v9 }
 0x42e   : > { %v1537_v13 = vsub.f32 %v1496_v39, %v1529_v11 }
 0x42f   : > { %v1535_v12 = vsub.f32 %v1494_v35, %v1527_v45  ;;  %v1518_v48 = vpop.xlane.xlu1 %1517  ;;  %v1821_v45 = vld [vmem:[%s2666_s10] ss:$0 sm:$0xff] }
 0x430   : > { %v1514_v46 = vpop.xlane.xlu0 %1513  ;;  %v1530_v14 = vmul.f32 0.03125, %v1518_v48  ;;  %v2576_v16 = vsel %vm1502_vm4, %v1537_v13, 0.0 }
 0x431   : > { %v1528_v47 = vmul.f32 0.03125, %v1514_v46  ;;  %v2570_v61 = vsel %vm1502_vm4, %v1535_v12, 0.0  ;;  %v1553_v20 = vmul.f32 %v2576_v16, %v2576_v16 }
 0x432   : > { %v1551_v15 = vmul.f32 %v2570_v61, %v2570_v61  ;;  %v1538_v18 = vsub.f32 %v1497_v53, %v1530_v14 }
 0x433   : > { %v1536_v17 = vsub.f32 %v1495_v40, %v1528_v47  ;;  %v1522_v22 = vpop.xlane.xlu1 %1521 }
 0x434   : > { %1559 = vadd.xlane.f32.xlu0 %v1551_v15  ;;  %v1520_v19 = vpop.xlane.xlu0 %1519  ;;  %v1532_v24 = vmul.f32 0.03125, %v1522_v22  ;;  %v2588_v25 = vsel %vm1502_vm4, %v1538_v18, 0.0 }
 0x435   : > { %v1531_v21 = vmul.f32 0.03125, %v1520_v19  ;;  %v2582_v23 = vsel %vm1502_vm4, %v1536_v17, 0.0  ;;  %v1554_v59 = vmul.f32 %v2588_v25, %v2588_v25 }
 0x436   : > { %v1552_v58 = vmul.f32 %v2582_v23, %v2582_v23  ;;  %v1540_v27 = vsub.f32 %v1499_v43, %v1532_v24 }
 0x437   : > { %v1539_v26 = vsub.f32 %v1498_v60, %v1531_v21  ;;  %v1526_v29 = vpop.xlane.xlu1 %1525 }
 0x438   : > { %1563 = vadd.xlane.f32.xlu0 %v1553_v20  ;;  %1561 = vadd.xlane.f32.xlu1 %v1552_v58  ;;  %v1524_v6 = vpop.xlane.xlu0 %1523  ;;  %v1534_v31 = vmul.f32 0.03125, %v1526_v29  ;;  %v2600_v33 = vsel %vm1502_vm4, %v1540_v27, 0.0 }
 0x439   : > { %v1533_v28 = vmul.f32 0.03125, %v1524_v6  ;;  %v2594_v30 = vsel %vm1502_vm4, %v1539_v26, 0.0  ;;  %v1556_v36 = vmul.f32 %v2600_v33, %v2600_v33 }
 0x43a   : > { %v1555_v32 = vmul.f32 %v2594_v30, %v2594_v30  ;;  %v1542_v35 = vsub.f32 %v1501_v5, %v1534_v31 }
 0x43b   : > { %v1541_v34 = vsub.f32 %v1500_v3, %v1533_v28 }
 0x43c   : > { %1565 = vadd.xlane.f32.xlu1 %v1554_v59  ;;  %1567 = vadd.xlane.f32.xlu0 %v1555_v32  ;;  %v2612_v39 = vsel %vm1502_vm4, %v1542_v35, 0.0 }
 0x43d   : > { %v2606_v37 = vsel %vm1502_vm4, %v1541_v34, 0.0  ;;  %v1558_v40 = vmul.f32 %v2612_v39, %v2612_v39 }
 0x43e   : > { %v1557_v38 = vmul.f32 %v2606_v37, %v2606_v37 }
 0x440   : > { %1569 = vadd.xlane.f32.xlu1 %v1556_v36  ;;  %1571 = vadd.xlane.f32.xlu0 %v1557_v38 }
 0x444   : > { %1573 = vadd.xlane.f32.xlu1 %v1558_v40 }
 0x4c1   : > { %v1560_v49 = vpop.xlane.xlu0 %1559 }
 0x4c2   : > { %v1575_v50 = vmul.f32 0.03125, %v1560_v49 }
 0x4c4   : > { %v1583_v51 = vadd.f32 1e-05, %v1575_v50 }
 0x4c5   : > { %v1562_v52 = vpop.xlane.xlu1 %1561  ;;  %v1564_v53 = vpop.xlane.xlu0 %1563 }
 0x4c6   : > { %2116 = vrsqrt.f32 %v1583_v51  ;;  %v1576_v54 = vmul.f32 0.03125, %v1562_v52  ;;  %v1577_v41 = vmul.f32 0.03125, %v1564_v53 }
 0x4c8   : > { %v1584_v55 = vadd.f32 1e-05, %v1576_v54  ;;  %v1585_v56 = vadd.f32 1e-05, %v1577_v41 }
 0x4c9   : > { %v1566_v57 = vpop.xlane.xlu1 %1565  ;;  %v1568_v63 = vpop.xlane.xlu0 %1567 }
 0x4ca   : > { %2118 = vrsqrt.f32 %v1584_v55  ;;  %v1578_v60 = vmul.f32 0.03125, %v1566_v57  ;;  %v1579_v42 = vmul.f32 0.03125, %v1568_v63 }
 0x4cb   : > { %2120 = vrsqrt.f32 %v1585_v56 }
 0x4cc   : > { %v1586_v43 = vadd.f32 1e-05, %v1578_v60  ;;  %v1587_v62 = vadd.f32 1e-05, %v1579_v42 }
 0x4cd   : > { %v1570_v44 = vpop.xlane.xlu1 %1569  ;;  %v1572_v0 = vpop.xlane.xlu0 %1571 }
 0x4ce   : > { %2122 = vrsqrt.f32 %v1586_v43  ;;  %v1580_v1 = vmul.f32 0.03125, %v1570_v44  ;;  %v1581_v2 = vmul.f32 0.03125, %v1572_v0 }
 0x4cf   : > { %2124 = vrsqrt.f32 %v1587_v62 }
 0x4d0   : > { %v2117_v3 = vpop.eup %2116  ;;  %v1588_v5 = vadd.f32 1e-05, %v1580_v1  ;;  %v1589_v7 = vadd.f32 1e-05, %v1581_v2 }
 0x4d1   : > { %v1599_v8 = vmul.f32 %v2117_v3, %v2570_v61  ;;  %v1574_v9 = vpop.xlane.xlu1 %1573 }
 0x4d2   : > { %2126 = vrsqrt.f32 %v1588_v5  ;;  %v1582_v10 = vmul.f32 0.03125, %v1574_v9 }
 0x4d3   : > { %v1614_v11 = vmul.f32 %v1820_v4, %v1599_v8  ;;  %2128 = vrsqrt.f32 %v1589_v7 }
 0x4d4   : > { %v2119_v12 = vpop.eup %2118  ;;  %v1590_v13 = vadd.f32 1e-05, %v1582_v10 }
 0x4d5   : > { %v2121_v46 = vpop.eup %2120  ;;  %v1629_v47 = vadd.f32 %v1821_v45, %v1614_v11  ;;  %v1600_v48 = vmul.f32 %v2119_v12, %v2582_v23 }
 0x4d6   : > { %v1601_v14 = vmul.f32 %v2121_v46, %v2576_v16  ;;  %2130 = vrsqrt.f32 %v1590_v13 }
 0x4d7   : > { %1637 = vst [vmem:[#allocation3] sm:$0xff] %v1629_v47  ;;  %v1615_v61 = vmul.f32 %v1820_v4, %v1600_v48 }
 0x4d8   : > { %v2123_v15 = vpop.eup %2122  ;;  %v1616_v17 = vmul.f32 %v1820_v4, %v1601_v14 }
 0x4d9   : > { %v2125_v18 = vpop.eup %2124  ;;  %v1630_v19 = vadd.f32 %v1821_v45, %v1615_v61  ;;  %v1602_v20 = vmul.f32 %v2123_v15, %v2588_v25 }
 0x4da   : > { %v1631_v21 = vadd.f32 %v1821_v45, %v1616_v17  ;;  %v1603_v22 = vmul.f32 %v2125_v18, %v2594_v30 }
 0x4db   : > { %1638 = vst [vmem:[#allocation3 + $0x8] sm:$0xff] %v1630_v19  ;;  %v1617_v24 = vmul.f32 %v1820_v4, %v1602_v20 }
 0x4dc   : > { %v2127_v58 = vpop.eup %2126  ;;  %1639 = vst [vmem:[#allocation3 + $0x10] sm:$0xff] %v1631_v21  ;;  %v1618_v26 = vmul.f32 %v1820_v4, %v1603_v22 }
 0x4dd   : > { %v2129_v23 = vpop.eup %2128  ;;  %v1632_v27 = vadd.f32 %v1821_v45, %v1617_v24  ;;  %v1604_v16 = vmul.f32 %v2127_v58, %v2600_v33 }
 0x4de   : > { %v1633_v6 = vadd.f32 %v1821_v45, %v1618_v26  ;;  %v1605_v59 = vmul.f32 %v2129_v23, %v2606_v37 }
 0x4df   : > { %1640 = vst [vmem:[#allocation3 + $0x18] sm:$0xff] %v1632_v27  ;;  %v1619_v28 = vmul.f32 %v1820_v4, %v1604_v16 }
 0x4e0   : > { %v2131_v29 = vpop.eup %2130  ;;  %1641 = vst [vmem:[#allocation3 + $0x20] sm:$0xff] %v1633_v6  ;;  %v1620_v25 = vmul.f32 %v1820_v4, %v1605_v59 }
 0x4e1   : > { %v1634_v31 = vadd.f32 %v1821_v45, %v1619_v28  ;;  %v1606_v30 = vmul.f32 %v2131_v29, %v2612_v39 }
 0x4e2   : > { %v1635_v32 = vadd.f32 %v1821_v45, %v1620_v25 }
 0x4e3   : > { %1642 = vst [vmem:[#allocation3 + $0x28] sm:$0xff] %v1634_v31  ;;  %v1621_v34 = vmul.f32 %v1820_v4, %v1606_v30 }
 0x4e4   : > { %1643 = vst [vmem:[#allocation3 + $0x30] sm:$0xff] %v1635_v32 }
 0x4e5   : > { %v1636_v35 = vadd.f32 %v1821_v45, %v1621_v34 }
 0x4e7   : > { %1644 = vst [vmem:[#allocation3 + $0x38] sm:$0xff] %v1636_v35 }
 0x4e8 PF: > { %p2066_p7 = scmp.eq.s32.totalorder %s2242_s18, 1  ;;  %s2173_s25 = smov [#allocation3]  }
 0x4e9   : > { %s1651_s27 = sshll.u32 %s2173_s25, 4  ;;  %s1652_s27 = int_to_ptr.vmem [resolvable:$true] %s1651_s27 }
 0x4ea   : > { %s2132_s29 = scalar_lea.vmem %s1652_s27, 1024  ;;  %p2139_p11 = scmp.lt.s32.totalorder %s1652_s27, %s1652_s27 }
 0x4eb   : > { %p2133_p8 = scmp.ne.s32.totalorder %s1652_s27, %s2132_s29  ;;  %p2140_p12 = scmp.lt.s32.totalorder %s2132_s29, %s2132_s29 }
 0x4ed   : > { %p2134_p9 = pnand %p2133_p8, %p2066_p7  ;;  %p2141_p13 = por %p2140_p12, %p2139_p11 }
 0x4ef   : > { %p2135_p10 = pneg %p2134_p9 }
 0x4f1   : > { %p2142_p0 = pnand %p2141_p13, %p2135_p10 }
 0x4f3   : > { %2145 = shalt.err (!%p2142_p0)
}
 0x4f4   : > { %s2146_s14 = scalar_lea.hbm %s2667_s11, 1024 }
 0x4f5   : > { %p2147_p1 = scmp.ne.s32.totalorder %s2667_s11, %s2146_s14  ;;  %p2152_p4 = scmp.lt.u32.totalorder %s2146_s14, %s2667_s11 }
 0x4f7   : > { %p2148_p2 = pnand %p2147_p1, %p2066_p7 }
 0x4f9   : > { %p2149_p3 = pneg %p2148_p2 }
 0x4fb   : > { %p2154_p5 = pnand %p2152_p4, %p2149_p3 }
 0x4fd   : > { %2157 = shalt.err (!%p2154_p5)
}
 0x4fe   : > { %s2174_s28 = smov 128   ;;  %s2175_s12 = smov 8  }
 0x4ff   : > { %2063 = dma.vmem_to_hbm [thread:$0]  (%p2066_p7), %s1652_s27, 1024, %s2667_s11, [#allocation4], %s2174_s28, %s2174_s28, %s2175_s12  }
 0x500   : > { %2163 = dma.done.wait (%p2066_p7), [#allocation4], 1024  }
 0x501   : > { %2165 = vsyncadd (%p2066_p7), [#allocation4], 4294966272 }
 0x502 PF: > { %s22_s17 = sadd.s32 1, %s2168_s17  }
 0x503   : > { %p19_p6 = scmp.ge.s32.totalorder %s22_s17, 4  }
 0x505   :  { %21 = sbr.rel (!%p19_p6) target bundleno = 1 (0x1), region = 108 }
 0x50c   :  { %1667 = vsyncpa [#allocation4], 1 }
 0x50d   :  { %1669 = vsyncpa [#allocation4 + $0x1], 1 }

</bundles_post_ra>
